<compile_context>
chip_gen: v7x
topology: tpu7x:2x2x1
jax: 0.10.0
libtpu: 0.0.40
codegen_flags: <defaults>
</compile_context>

<pallas_src>
from functools import partial

import jax
import jax.numpy as jnp
from jax import lax
from jax.experimental import pallas as pl
from jax.experimental.pallas import tpu as pltpu

# ---------------- problem sizes (small but TPU-tile friendly) ----------------
B = 2
H = W_SP = 16
HW = H * W_SP              # 256 pixels
C_IN = 64                  # resnet50.layer1[0].conv1 input channels
C_MID = 64                 # conv1 output channels
C = 256                    # conv3 output / AttentionBlock channels
NB = 4                     # number of attention blocks
LN_EPS = 1e-5
BN_EPS = 1e-5


# ------------------------------ Pallas kernel --------------------------------
def pixelnet_kernel(x_ref, weff_ref, beff_ref, wa_ref, wt1_ref, bt1_ref,
                    lng_ref, lnb_ref, wt2w_ref, wsum_ref, wsh_ref, o_ref, *, bb):
    """Fused shallow + 4x AttentionBlock + W(1x1 1024->256)+BN + residual.

    One grid step processes `bb` batch elements (bb = B on single-TC chips,
    bb = 1 on v7x).  Matmuls use bf16 operands with f32 accumulation on the
    MXU; softmax / LayerNorm / affine math stays f32.
    """
    # ---- shallow ResNet branch, collapsed to a single affine matmul ----
    t = jnp.dot(x_ref[...], weff_ref[...],
                preferred_element_type=jnp.float32) + beff_ref[...]   # (bb*HW, C) f32
    t_bf = t.astype(jnp.bfloat16)

    wa = wa_ref[...]
    bt1 = bt1_ref[...]
    lng = lng_ref[...]
    lnb = lnb_ref[...]
    wsh = wsh_ref[...]

    deltas = []
    for b in range(bb):                                  # static unroll over fused batch
        tb = t_bf[b * HW:(b + 1) * HW, :]                # (HW, C), tile-aligned slice

        # attention logits for all 4 blocks in one MXU call, lane-dense softmax axis.
        # (contracting last-with-last, same pattern as flash q.k^T — no relayout of tb)
        logits = jnp.einsum('nc,pc->np', wa, tb,
                            preferred_element_type=jnp.float32)       # (NB, HW)
        m = jnp.max(logits, axis=1, keepdims=True)
        e = jnp.exp(logits - m)
        soft = e * pl.reciprocal(jnp.sum(e, axis=1, keepdims=True), approx=True)
        # attention-pooled features for all 4 blocks at once: (NB, C)
        feats = jnp.dot(soft.astype(jnp.bfloat16), tb,
                        preferred_element_type=jnp.float32)
        feats_bf = feats.astype(jnp.bfloat16)

        # transformer conv1 for all 4 blocks (back-to-back M=1 matmuls), then ONE
        # stacked LayerNorm([C,1,1]) / affine / ReLU pass on the (NB, C) tile.
        f1 = jnp.concatenate(
            [jnp.dot(feats_bf[n:n + 1, :], wt1_ref[n],
                     preferred_element_type=jnp.float32) for n in range(NB)],
            axis=0) + bt1                                             # (NB, C)
        mu = jnp.mean(f1, axis=-1, keepdims=True)
        var = jnp.mean((f1 - mu) ** 2, axis=-1, keepdims=True)
        f1 = (f1 - mu) * lax.rsqrt(var + LN_EPS)
        f1 = jnp.maximum(f1 * lng + lnb, 0.0)
        f1_bf = f1.astype(jnp.bfloat16)

        # transformer conv2 fused with its W-conv slice and the W BN scale
        # (wt2w[n] = (tr2_w[n] @ ww[n]) * wsc, precomputed in the wrapper).
        d = jnp.dot(f1_bf[0:1, :], wt2w_ref[0], preferred_element_type=jnp.float32)
        for n in range(1, NB):
            d = d + jnp.dot(f1_bf[n:n + 1, :], wt2w_ref[n],
                            preferred_element_type=jnp.float32)
        deltas.append(d + wsh)                                        # (1, C)

    # ---- dominant matmul last: t @ (wsum*wsc + I) also carries the residual ----
    y = jnp.dot(t_bf, wsum_ref[...], preferred_element_type=jnp.float32)  # (bb*HW, C)
    for b in range(bb):
        o_ref[b * HW:(b + 1) * HW, :] = y[b * HW:(b + 1) * HW, :] + deltas[b]


# ------------------------------ JAX wrappers ---------------------------------
def bn_fold(gamma, beta, mean, var, eps=BN_EPS):
    scale = gamma / jnp.sqrt(var + eps)
    shift = beta - mean * scale
    return scale, shift


def _fuse_batch_on_single_tc():
    """True on single-TensorCore chips (v5e/v6e): fuse the batch into one grid step.
    On v7x (2 TCs/chip) keep grid=(B,) 'parallel' so both cores are used."""
    try:
        kind = jax.devices()[0].device_kind.lower()
    except Exception:
        return False
    return any(s in kind for s in ("v5 lite", "v5lite", "v5e",
                                   "v6 lite", "v6lite", "v6e"))


@partial(jax.jit, static_argnames=("bb",))
def pixelnet4b_forward(x_nchw, p, *, bb=1):
    b, cin, h, w = x_nchw.shape
    assert cin == C_IN and h * w == HW and b % bb == 0
    # NCHW -> (B*HW, C_IN), bf16 (cast fuses into the transpose XLA already does)
    x = jnp.transpose(x_nchw, (0, 2, 3, 1)).reshape(b * h * w, cin).astype(jnp.bfloat16)

    # shallow: conv1+BN1 then conv3+BN3 with no nonlinearity in between
    # -> fold into a single (C_IN, C) matmul weight + per-channel bias.
    s1, b1 = bn_fold(p["bn1_g"], p["bn1_b"], p["bn1_m"], p["bn1_v"])
    s3, b3 = bn_fold(p["bn3_g"], p["bn3_b"], p["bn3_m"], p["bn3_v"])
    w_eff = ((p["w_conv1"] * s1[None, :]) @ p["w_conv3"]) * s3[None, :]
    b_eff = (b1 @ p["w_conv3"]) * s3 + b3

    # W conv (1024->256) + BN, fully folded (f32 algebra, single bf16 cast each):
    #   out = t @ (wsum*wsc + I) + sum_i relu_i @ ((tr2_w[i] @ ww[i]) * wsc) + wsh
    #   wsh = BN shift + conv bias*wsc + (sum_i tr2_b[i] @ ww[i]) * wsc
    wsc, wsh0 = bn_fold(p["wbn_g"], p["wbn_b"], p["wbn_m"], p["wbn_v"])
    wt2w = jnp.einsum('ncd,nde->nce', p["tr2_w"], p["w_w"]) * wsc[None, None, :]
    wsh = wsh0 + p["w_bias"] * wsc + jnp.einsum('nd,nde->e', p["tr2_b"], p["w_w"]) * wsc
    wsum_id = jnp.sum(p["w_w"], axis=0) * wsc[None, :] + jnp.eye(C, dtype=jnp.float32)

    bf = lambda a: a.astype(jnp.bfloat16)

    out = pl.pallas_call(
        partial(pixelnet_kernel, bb=bb),
        out_shape=jax.ShapeDtypeStruct((b * HW, C), jnp.float32),
        grid_spec=pltpu.PrefetchScalarGridSpec(
            num_scalar_prefetch=0,
            grid=(b // bb,),
            in_specs=[
                pl.BlockSpec((bb * HW, C_IN), lambda i: (i, 0)),    # x (bf16)
                pl.BlockSpec((C_IN, C), lambda i: (0, 0)),          # folded shallow weight
                pl.BlockSpec((1, C), lambda i: (0, 0)),             # folded shallow bias
                pl.BlockSpec((NB, C), lambda i: (0, 0)),            # attention conv weights
                pl.BlockSpec((NB, C, C), lambda i: (0, 0, 0)),      # transformer conv1 w
                pl.BlockSpec((NB, C), lambda i: (0, 0)),            # conv1 bias
                pl.BlockSpec((NB, C), lambda i: (0, 0)),            # LN gamma
                pl.BlockSpec((NB, C), lambda i: (0, 0)),            # LN beta
                pl.BlockSpec((NB, C, C), lambda i: (0, 0, 0)),      # conv2 (x) W-slice (x) BN scale
                pl.BlockSpec((C, C), lambda i: (0, 0)),             # wsum*wsc + I (residual folded)
                pl.BlockSpec((1, C), lambda i: (0, 0)),             # BN shift (+all bias folds)
            ],
            out_specs=pl.BlockSpec((bb * HW, C), lambda i: (i, 0)),
        ),
        compiler_params=pltpu.CompilerParams(
            dimension_semantics=("parallel",), vmem_limit_bytes=16 << 20),
    )(x, bf(w_eff), b_eff.reshape(1, C), bf(p["att_w"]),
      bf(p["tr1_w"]), p["tr1_b"], p["ln_g"], p["ln_b"],
      bf(wt2w), bf(wsum_id), wsh.reshape(1, C))

    # (B*HW, C) -> NCHW
    return jnp.transpose(out.reshape(b, h, w, C), (0, 3, 1, 2))


@jax.jit
def reference_forward(x_nchw, p):
    """Pure-JAX f32 reference following the original per-block PyTorch structure."""
    b, cin, h, w = x_nchw.shape
    x = jnp.transpose(x_nchw, (0, 2, 3, 1)).reshape(b, h * w, cin)
    s1, b1 = bn_fold(p["bn1_g"], p["bn1_b"], p["bn1_m"], p["bn1_v"])
    s3, b3 = bn_fold(p["bn3_g"], p["bn3_b"], p["bn3_m"], p["bn3_v"])
    t = (x @ p["w_conv1"]) * s1 + b1
    t = (t @ p["w_conv3"]) * s3 + b3                                   # (B, HW, C)

    branches = []
    for i in range(NB):
        logits = jnp.einsum('bpc,c->bp', t, p["att_w"][i])
        soft = jax.nn.softmax(logits, axis=1)
        feat = jnp.einsum('bpc,bp->bc', t, soft)                       # (B, C)
        f1 = feat @ p["tr1_w"][i] + p["tr1_b"][i]
        mu = jnp.mean(f1, axis=-1, keepdims=True)
        var = jnp.mean((f1 - mu) ** 2, axis=-1, keepdims=True)
        f1 = (f1 - mu) / jnp.sqrt(var + LN_EPS)
        f1 = f1 * p["ln_g"][i] + p["ln_b"][i]
        f1 = jnp.maximum(f1, 0.0)
        f2 = f1 @ p["tr2_w"][i] + p["tr2_b"][i]                        # (B, C)
        branches.append(t + f2[:, None, :])

    cat = jnp.concatenate(branches, axis=-1)                           # (B, HW, 4C)
    y = cat @ p["w_w"].reshape(NB * C, C) + p["w_bias"]
    wsc, wsh = bn_fold(p["wbn_g"], p["wbn_b"], p["wbn_m"], p["wbn_v"])
    y = y * wsc + wsh
    out = y + t
    return jnp.transpose(out.reshape(b, h, w, C), (0, 3, 1, 2))


def init_params(key):
    """Deterministic synthetic parameters (matmul-layout weights: [c_in, c_out])."""
    ks = jax.random.split(key, 32)
    n = lambda k, shape, s=0.05: jax.random.normal(k, shape, jnp.float32) * s
    p = {
        # ShallowResNet (resnet bottleneck 1x1 convs have no bias)
        "w_conv1": n(ks[0], (C_IN, C_MID)),
        "bn1_g": 1.0 + n(ks[1], (C_MID,), 0.1), "bn1_b": n(ks[2], (C_MID,), 0.1),
        "bn1_m": n(ks[3], (C_MID,), 0.1),
        "bn1_v": jax.random.uniform(ks[4], (C_MID,), jnp.float32, 0.5, 1.5),
        "w_conv3": n(ks[5], (C_MID, C)),
        "bn3_g": 1.0 + n(ks[6], (C,), 0.1), "bn3_b": n(ks[7], (C,), 0.1),
        "bn3_m": n(ks[8], (C,), 0.1),
        "bn3_v": jax.random.uniform(ks[9], (C,), jnp.float32, 0.5, 1.5),
        # 4 AttentionBlocks (stacked along a leading NB axis)
        # attention conv C->1 bias omitted: softmax over pixels is invariant to it.
        "att_w": n(ks[10], (NB, C)),
        "tr1_w": n(ks[11], (NB, C, C)), "tr1_b": n(ks[12], (NB, C), 0.1),
        "ln_g": 1.0 + n(ks[13], (NB, C), 0.1), "ln_b": n(ks[14], (NB, C), 0.1),
        "tr2_w": n(ks[15], (NB, C, C)), "tr2_b": n(ks[16], (NB, C), 0.1),
        # W: conv 1024->256 (+bias) + BatchNorm(256)
        # i-th slice = rows [i*C:(i+1)*C] of the 1024x256 matmul weight
        "w_w": n(ks[17], (NB, C, C)),
        "w_bias": n(ks[18], (C,), 0.1),
        "wbn_g": 1.0 + n(ks[19], (C,), 0.1), "wbn_b": n(ks[20], (C,), 0.1),
        "wbn_m": n(ks[21], (C,), 0.1),
        "wbn_v": jax.random.uniform(ks[22], (C,), jnp.float32, 0.5, 1.5),
    }
    return p


if __name__ == "__main__":
    key = jax.random.PRNGKey(0)
    k_x, k_p = jax.random.split(key)
    x = jax.random.normal(k_x, (B, C_IN, H, W_SP), jnp.float32)  # NCHW, like PyTorch
    params = init_params(k_p)

    # single-TC chips (v5e/v6e): fuse the whole batch into one grid step;
    # v7x (or unknown): one batch element per grid step, 'parallel' over 2 TCs.
    bb = B if _fuse_batch_on_single_tc() else 1

    out = jax.block_until_ready(pixelnet4b_forward(x, params, bb=bb))
    assert out.shape == (B, C, H, W_SP), out.shape
    assert bool(jnp.all(jnp.isfinite(out)))

    # Validate the algebraic refactors + bf16 matmuls (incl. the residual fold)
    # against a pure-f32 reference.
    ref = jax.block_until_ready(reference_forward(x, params))
    err = float(jnp.max(jnp.abs(out - ref)))
    scale = float(jnp.max(jnp.abs(ref)))
    assert err <= 0.05 * scale + 1e-3, ("numerics mismatch", err, scale)

    print("KERNEL_OK")
</pallas_src>

<mosaic_0001>
module attributes {stable_mosaic.version = 11 : i64} {
  func.func @pixelnet_kernel(%arg0: i32, %arg1: memref<256x64xbf16, #tpu.memory_space<vmem>>, %arg2: memref<64x256xbf16, #tpu.memory_space<vmem>>, %arg3: memref<1x256xf32, #tpu.memory_space<vmem>>, %arg4: memref<4x256xbf16, #tpu.memory_space<vmem>>, %arg5: memref<4x256x256xbf16, #tpu.memory_space<vmem>>, %arg6: memref<4x256xf32, #tpu.memory_space<vmem>>, %arg7: memref<4x256xf32, #tpu.memory_space<vmem>>, %arg8: memref<4x256xf32, #tpu.memory_space<vmem>>, %arg9: memref<4x256x256xbf16, #tpu.memory_space<vmem>>, %arg10: memref<256x256xbf16, #tpu.memory_space<vmem>>, %arg11: memref<1x256xf32, #tpu.memory_space<vmem>>, %arg12: memref<256x256xf32, #tpu.memory_space<vmem>>) attributes {dimension_semantics = [#tpu.dimension_semantics<parallel>], iteration_bounds = array<i64: 2>, scalar_prefetch = 0 : i64, scratch_operands = 0 : i64, tpu.core_type = #tpu.core_type<tc>, window_params = [{transform_indices = @transform_0, window_bounds = array<i64: 256, 64>}, {pipeline_mode = #tpu.pipeline_mode<synchronous>, transform_indices = @transform_1, window_bounds = array<i64: 64, 256>}, {pipeline_mode = #tpu.pipeline_mode<synchronous>, transform_indices = @transform_2, window_bounds = array<i64: 1, 256>}, {pipeline_mode = #tpu.pipeline_mode<synchronous>, transform_indices = @transform_3, window_bounds = array<i64: 4, 256>}, {pipeline_mode = #tpu.pipeline_mode<synchronous>, transform_indices = @transform_4, window_bounds = array<i64: 4, 256, 256>}, {pipeline_mode = #tpu.pipeline_mode<synchronous>, transform_indices = @transform_5, window_bounds = array<i64: 4, 256>}, {pipeline_mode = #tpu.pipeline_mode<synchronous>, transform_indices = @transform_6, window_bounds = array<i64: 4, 256>}, {pipeline_mode = #tpu.pipeline_mode<synchronous>, transform_indices = @transform_7, window_bounds = array<i64: 4, 256>}, {pipeline_mode = #tpu.pipeline_mode<synchronous>, transform_indices = @transform_8, window_bounds = array<i64: 4, 256, 256>}, {pipeline_mode = #tpu.pipeline_mode<synchronous>, transform_indices = @transform_9, window_bounds = array<i64: 256, 256>}, {pipeline_mode = #tpu.pipeline_mode<synchronous>, transform_indices = @transform_10, window_bounds = array<i64: 1, 256>}, {transform_indices = @transform_11, window_bounds = array<i64: 256, 256>}]} {
    %c0 = arith.constant 0 : index
    %c0_0 = arith.constant 0 : index
    %0 = vector.load %arg1[%c0, %c0_0] : memref<256x64xbf16, #tpu.memory_space<vmem>>, vector<256x64xbf16>
    %c0_1 = arith.constant 0 : index
    %c0_2 = arith.constant 0 : index
    %1 = vector.load %arg2[%c0_1, %c0_2] : memref<64x256xbf16, #tpu.memory_space<vmem>>, vector<64x256xbf16>
    %cst = arith.constant dense<0.000000e+00> : vector<256x256xf32>
    %2 = tpu.matmul %0, %1, %cst {dimension_numbers = #tpu.dot_dimension_numbers<[1], [0], [0], [1], [0, 0, 1, 1], [], []>} : vector<256x64xbf16>, vector<64x256xbf16>, vector<256x256xf32> -> vector<256x256xf32>
    %c0_3 = arith.constant 0 : index
    %c0_4 = arith.constant 0 : index
    %3 = vector.load %arg3[%c0_3, %c0_4] : memref<1x256xf32, #tpu.memory_space<vmem>>, vector<1x256xf32>
    %4 = vector.broadcast %3 : vector<1x256xf32> to vector<256x256xf32>
    %5 = arith.addf %2, %4 : vector<256x256xf32>
    %6 = arith.truncf %5 : vector<256x256xf32> to vector<256x256xbf16>
    %c0_5 = arith.constant 0 : index
    %c0_6 = arith.constant 0 : index
    %7 = vector.load %arg4[%c0_5, %c0_6] : memref<4x256xbf16, #tpu.memory_space<vmem>>, vector<4x256xbf16>
    %c0_7 = arith.constant 0 : index
    %c0_8 = arith.constant 0 : index
    %8 = vector.load %arg6[%c0_7, %c0_8] : memref<4x256xf32, #tpu.memory_space<vmem>>, vector<4x256xf32>
    %c0_9 = arith.constant 0 : index
    %c0_10 = arith.constant 0 : index
    %9 = vector.load %arg7[%c0_9, %c0_10] : memref<4x256xf32, #tpu.memory_space<vmem>>, vector<4x256xf32>
    %c0_11 = arith.constant 0 : index
    %c0_12 = arith.constant 0 : index
    %10 = vector.load %arg8[%c0_11, %c0_12] : memref<4x256xf32, #tpu.memory_space<vmem>>, vector<4x256xf32>
    %c0_13 = arith.constant 0 : index
    %c0_14 = arith.constant 0 : index
    %11 = vector.load %arg11[%c0_13, %c0_14] : memref<1x256xf32, #tpu.memory_space<vmem>>, vector<1x256xf32>
    "tpu.trace_start"() <{level = 10 : i32, message = "nc,pc->np"}> : () -> ()
    %cst_15 = arith.constant dense<0.000000e+00> : vector<4x256xf32>
    %12 = tpu.matmul %7, %6, %cst_15 {dimension_numbers = #tpu.dot_dimension_numbers<[1], [1], [0], [0], [0, 0, 1, 0], [], []>} : vector<4x256xbf16>, vector<256x256xbf16>, vector<4x256xf32> -> vector<4x256xf32>
    "tpu.trace_stop"() : () -> ()
    %cst_16 = arith.constant dense<0xFF800000> : vector<4xf32>
    %13 = vector.multi_reduction <maximumf>, %12, %cst_16 [1] : vector<4x256xf32> to vector<4xf32>
    %14 = vector.shape_cast %13 : vector<4xf32> to vector<4x1xf32>
    %15 = vector.broadcast %14 : vector<4x1xf32> to vector<4x256xf32>
    %16 = arith.subf %12, %15 : vector<4x256xf32>
    %17 = math.exp %16 : vector<4x256xf32>
    %cst_17 = arith.constant dense<0.000000e+00> : vector<4xf32>
    %18 = vector.multi_reduction <add>, %17, %cst_17 [1] : vector<4x256xf32> to vector<4xf32>
    %19 = vector.shape_cast %18 : vector<4xf32> to vector<4x1xf32>
    %20 = tpu.reciprocal %19 {approx = true} : vector<4x1xf32> -> vector<4x1xf32>
    %21 = vector.broadcast %20 : vector<4x1xf32> to vector<4x256xf32>
    %22 = arith.mulf %17, %21 : vector<4x256xf32>
    %23 = arith.truncf %22 : vector<4x256xf32> to vector<4x256xbf16>
    %cst_18 = arith.constant dense<0.000000e+00> : vector<4x256xf32>
    %24 = tpu.matmul %23, %6, %cst_18 {dimension_numbers = #tpu.dot_dimension_numbers<[1], [0], [0], [1], [0, 0, 1, 1], [], []>} : vector<4x256xbf16>, vector<256x256xbf16>, vector<4x256xf32> -> vector<4x256xf32>
    %25 = arith.truncf %24 : vector<4x256xf32> to vector<4x256xbf16>
    %26 = vector.extract_strided_slice %25 {offsets = [0, 0], sizes = [1, 256], strides = [1, 1]} : vector<4x256xbf16> to vector<1x256xbf16>
    %c0_19 = arith.constant 0 : index
    %c0_20 = arith.constant 0 : index
    %c0_21 = arith.constant 0 : index
    %27 = vector.load %arg5[%c0_19, %c0_20, %c0_21] : memref<4x256x256xbf16, #tpu.memory_space<vmem>>, vector<1x256x256xbf16>
    %28 = vector.shape_cast %27 : vector<1x256x256xbf16> to vector<256x256xbf16>
    %cst_22 = arith.constant dense<0.000000e+00> : vector<1x256xf32>
    %29 = tpu.matmul %26, %28, %cst_22 {dimension_numbers = #tpu.dot_dimension_numbers<[1], [0], [0], [1], [0, 0, 1, 1], [], []>} : vector<1x256xbf16>, vector<256x256xbf16>, vector<1x256xf32> -> vector<1x256xf32>
    %30 = vector.extract_strided_slice %25 {offsets = [1, 0], sizes = [1, 256], strides = [1, 1]} : vector<4x256xbf16> to vector<1x256xbf16>
    %c1 = arith.constant 1 : index
    %c0_23 = arith.constant 0 : index
    %c0_24 = arith.constant 0 : index
    %31 = vector.load %arg5[%c1, %c0_23, %c0_24] : memref<4x256x256xbf16, #tpu.memory_space<vmem>>, vector<1x256x256xbf16>
    %32 = vector.shape_cast %31 : vector<1x256x256xbf16> to vector<256x256xbf16>
    %cst_25 = arith.constant dense<0.000000e+00> : vector<1x256xf32>
    %33 = tpu.matmul %30, %32, %cst_25 {dimension_numbers = #tpu.dot_dimension_numbers<[1], [0], [0], [1], [0, 0, 1, 1], [], []>} : vector<1x256xbf16>, vector<256x256xbf16>, vector<1x256xf32> -> vector<1x256xf32>
    %34 = vector.extract_strided_slice %25 {offsets = [2, 0], sizes = [1, 256], strides = [1, 1]} : vector<4x256xbf16> to vector<1x256xbf16>
    %c2 = arith.constant 2 : index
    %c0_26 = arith.constant 0 : index
    %c0_27 = arith.constant 0 : index
    %35 = vector.load %arg5[%c2, %c0_26, %c0_27] : memref<4x256x256xbf16, #tpu.memory_space<vmem>>, vector<1x256x256xbf16>
    %36 = vector.shape_cast %35 : vector<1x256x256xbf16> to vector<256x256xbf16>
    %cst_28 = arith.constant dense<0.000000e+00> : vector<1x256xf32>
    %37 = tpu.matmul %34, %36, %cst_28 {dimension_numbers = #tpu.dot_dimension_numbers<[1], [0], [0], [1], [0, 0, 1, 1], [], []>} : vector<1x256xbf16>, vector<256x256xbf16>, vector<1x256xf32> -> vector<1x256xf32>
    %38 = vector.extract_strided_slice %25 {offsets = [3, 0], sizes = [1, 256], strides = [1, 1]} : vector<4x256xbf16> to vector<1x256xbf16>
    %c3 = arith.constant 3 : index
    %c0_29 = arith.constant 0 : index
    %c0_30 = arith.constant 0 : index
    %39 = vector.load %arg5[%c3, %c0_29, %c0_30] : memref<4x256x256xbf16, #tpu.memory_space<vmem>>, vector<1x256x256xbf16>
    %40 = vector.shape_cast %39 : vector<1x256x256xbf16> to vector<256x256xbf16>
    %cst_31 = arith.constant dense<0.000000e+00> : vector<1x256xf32>
    %41 = tpu.matmul %38, %40, %cst_31 {dimension_numbers = #tpu.dot_dimension_numbers<[1], [0], [0], [1], [0, 0, 1, 1], [], []>} : vector<1x256xbf16>, vector<256x256xbf16>, vector<1x256xf32> -> vector<1x256xf32>
    %42 = tpu.concatenate %29, %33, %37, %41 in 0 : vector<1x256xf32>, vector<1x256xf32>, vector<1x256xf32>, vector<1x256xf32> -> vector<4x256xf32>
    %43 = arith.addf %42, %8 : vector<4x256xf32>
    %cst_32 = arith.constant dense<0.000000e+00> : vector<4xf32>
    %44 = vector.multi_reduction <add>, %43, %cst_32 [1] : vector<4x256xf32> to vector<4xf32>
    %45 = vector.shape_cast %44 : vector<4xf32> to vector<4x1xf32>
    %cst_33 = arith.constant 2.560000e+02 : f32
    %46 = vector.broadcast %cst_33 : f32 to vector<4x1xf32>
    %47 = arith.divf %45, %46 : vector<4x1xf32>
    %48 = vector.broadcast %47 : vector<4x1xf32> to vector<4x256xf32>
    %49 = arith.subf %43, %48 : vector<4x256xf32>
    %50 = arith.mulf %49, %49 : vector<4x256xf32>
    %cst_34 = arith.constant dense<0.000000e+00> : vector<4xf32>
    %51 = vector.multi_reduction <add>, %50, %cst_34 [1] : vector<4x256xf32> to vector<4xf32>
    %52 = vector.shape_cast %51 : vector<4xf32> to vector<4x1xf32>
    %cst_35 = arith.constant 2.560000e+02 : f32
    %53 = vector.broadcast %cst_35 : f32 to vector<4x1xf32>
    %54 = arith.divf %52, %53 : vector<4x1xf32>
    %55 = vector.broadcast %47 : vector<4x1xf32> to vector<4x256xf32>
    %56 = arith.subf %43, %55 : vector<4x256xf32>
    %cst_36 = arith.constant 9.99999974E-6 : f32
    %57 = vector.broadcast %cst_36 : f32 to vector<4x1xf32>
    %58 = arith.addf %54, %57 : vector<4x1xf32>
    %59 = math.rsqrt %58 : vector<4x1xf32>
    %60 = vector.broadcast %59 : vector<4x1xf32> to vector<4x256xf32>
    %61 = arith.mulf %56, %60 : vector<4x256xf32>
    %62 = arith.mulf %61, %9 : vector<4x256xf32>
    %63 = arith.addf %62, %10 : vector<4x256xf32>
    %cst_37 = arith.constant 0.000000e+00 : f32
    %64 = vector.broadcast %cst_37 : f32 to vector<4x256xf32>
    %65 = arith.maximumf %63, %64 : vector<4x256xf32>
    %66 = arith.truncf %65 : vector<4x256xf32> to vector<4x256xbf16>
    %67 = vector.extract_strided_slice %66 {offsets = [0, 0], sizes = [1, 256], strides = [1, 1]} : vector<4x256xbf16> to vector<1x256xbf16>
    %c0_38 = arith.constant 0 : index
    %c0_39 = arith.constant 0 : index
    %c0_40 = arith.constant 0 : index
    %68 = vector.load %arg9[%c0_38, %c0_39, %c0_40] : memref<4x256x256xbf16, #tpu.memory_space<vmem>>, vector<1x256x256xbf16>
    %69 = vector.shape_cast %68 : vector<1x256x256xbf16> to vector<256x256xbf16>
    %cst_41 = arith.constant dense<0.000000e+00> : vector<1x256xf32>
    %70 = tpu.matmul %67, %69, %cst_41 {dimension_numbers = #tpu.dot_dimension_numbers<[1], [0], [0], [1], [0, 0, 1, 1], [], []>} : vector<1x256xbf16>, vector<256x256xbf16>, vector<1x256xf32> -> vector<1x256xf32>
    %71 = vector.extract_strided_slice %66 {offsets = [1, 0], sizes = [1, 256], strides = [1, 1]} : vector<4x256xbf16> to vector<1x256xbf16>
    %c1_42 = arith.constant 1 : index
    %c0_43 = arith.constant 0 : index
    %c0_44 = arith.constant 0 : index
    %72 = vector.load %arg9[%c1_42, %c0_43, %c0_44] : memref<4x256x256xbf16, #tpu.memory_space<vmem>>, vector<1x256x256xbf16>
    %73 = vector.shape_cast %72 : vector<1x256x256xbf16> to vector<256x256xbf16>
    %cst_45 = arith.constant dense<0.000000e+00> : vector<1x256xf32>
    %74 = tpu.matmul %71, %73, %cst_45 {dimension_numbers = #tpu.dot_dimension_numbers<[1], [0], [0], [1], [0, 0, 1, 1], [], []>} : vector<1x256xbf16>, vector<256x256xbf16>, vector<1x256xf32> -> vector<1x256xf32>
    %75 = arith.addf %70, %74 : vector<1x256xf32>
    %76 = vector.extract_strided_slice %66 {offsets = [2, 0], sizes = [1, 256], strides = [1, 1]} : vector<4x256xbf16> to vector<1x256xbf16>
    %c2_46 = arith.constant 2 : index
    %c0_47 = arith.constant 0 : index
    %c0_48 = arith.constant 0 : index
    %77 = vector.load %arg9[%c2_46, %c0_47, %c0_48] : memref<4x256x256xbf16, #tpu.memory_space<vmem>>, vector<1x256x256xbf16>
    %78 = vector.shape_cast %77 : vector<1x256x256xbf16> to vector<256x256xbf16>
    %cst_49 = arith.constant dense<0.000000e+00> : vector<1x256xf32>
    %79 = tpu.matmul %76, %78, %cst_49 {dimension_numbers = #tpu.dot_dimension_numbers<[1], [0], [0], [1], [0, 0, 1, 1], [], []>} : vector<1x256xbf16>, vector<256x256xbf16>, vector<1x256xf32> -> vector<1x256xf32>
    %80 = arith.addf %75, %79 : vector<1x256xf32>
    %81 = vector.extract_strided_slice %66 {offsets = [3, 0], sizes = [1, 256], strides = [1, 1]} : vector<4x256xbf16> to vector<1x256xbf16>
    %c3_50 = arith.constant 3 : index
    %c0_51 = arith.constant 0 : index
    %c0_52 = arith.constant 0 : index
    %82 = vector.load %arg9[%c3_50, %c0_51, %c0_52] : memref<4x256x256xbf16, #tpu.memory_space<vmem>>, vector<1x256x256xbf16>
    %83 = vector.shape_cast %82 : vector<1x256x256xbf16> to vector<256x256xbf16>
    %cst_53 = arith.constant dense<0.000000e+00> : vector<1x256xf32>
    %84 = tpu.matmul %81, %83, %cst_53 {dimension_numbers = #tpu.dot_dimension_numbers<[1], [0], [0], [1], [0, 0, 1, 1], [], []>} : vector<1x256xbf16>, vector<256x256xbf16>, vector<1x256xf32> -> vector<1x256xf32>
    %85 = arith.addf %80, %84 : vector<1x256xf32>
    %86 = arith.addf %85, %11 : vector<1x256xf32>
    %c0_54 = arith.constant 0 : index
    %c0_55 = arith.constant 0 : index
    %87 = vector.load %arg10[%c0_54, %c0_55] : memref<256x256xbf16, #tpu.memory_space<vmem>>, vector<256x256xbf16>
    %cst_56 = arith.constant dense<0.000000e+00> : vector<256x256xf32>
    %88 = tpu.matmul %6, %87, %cst_56 {dimension_numbers = #tpu.dot_dimension_numbers<[1], [0], [0], [1], [0, 0, 1, 1], [], []>} : vector<256x256xbf16>, vector<256x256xbf16>, vector<256x256xf32> -> vector<256x256xf32>
    %89 = vector.broadcast %86 : vector<1x256xf32> to vector<256x256xf32>
    %90 = arith.addf %88, %89 : vector<256x256xf32>
    %c0_57 = arith.constant 0 : index
    %c0_58 = arith.constant 0 : index
    %91 = vector.load %arg12[%c0_57, %c0_58] : memref<256x256xf32, #tpu.memory_space<vmem>>, vector<256x256xf32>
    tpu.vector_store %arg12[%c0_57, %c0_58], %90 {strides = array<i32>} : memref<256x256xf32, #tpu.memory_space<vmem>>, vector<256x256xf32>,
    return
  }
  func.func @transform_0(%arg0: i32) -> (i32, i32) {
    %c0_i32 = arith.constant 0 : i32
    %c0_i32_0 = arith.constant 0 : i32
    return %arg0, %c0_i32 : i32, i32
  }
  func.func @transform_1(%arg0: i32) -> (i32, i32) {
    %c0_i32 = arith.constant 0 : i32
    %c0_i32_0 = arith.constant 0 : i32
    %c0_i32_1 = arith.constant 0 : i32
    return %c0_i32, %c0_i32_0 : i32, i32
  }
  func.func @transform_2(%arg0: i32) -> (i32, i32) {
    %c0_i32 = arith.constant 0 : i32
    %c0_i32_0 = arith.constant 0 : i32
    %c0_i32_1 = arith.constant 0 : i32
    return %c0_i32, %c0_i32_0 : i32, i32
  }
  func.func @transform_3(%arg0: i32) -> (i32, i32) {
    %c0_i32 = arith.constant 0 : i32
    %c0_i32_0 = arith.constant 0 : i32
    %c0_i32_1 = arith.constant 0 : i32
    return %c0_i32, %c0_i32_0 : i32, i32
  }
  func.func @transform_4(%arg0: i32) -> (i32, i32, i32) {
    %c0_i32 = arith.constant 0 : i32
    %c0_i32_0 = arith.constant 0 : i32
    %c0_i32_1 = arith.constant 0 : i32
    %c0_i32_2 = arith.constant 0 : i32
    return %c0_i32, %c0_i32_0, %c0_i32_1 : i32, i32, i32
  }
  func.func @transform_5(%arg0: i32) -> (i32, i32) {
    %c0_i32 = arith.constant 0 : i32
    %c0_i32_0 = arith.constant 0 : i32
    %c0_i32_1 = arith.constant 0 : i32
    return %c0_i32, %c0_i32_0 : i32, i32
  }
  func.func @transform_6(%arg0: i32) -> (i32, i32) {
    %c0_i32 = arith.constant 0 : i32
    %c0_i32_0 = arith.constant 0 : i32
    %c0_i32_1 = arith.constant 0 : i32
    return %c0_i32, %c0_i32_0 : i32, i32
  }
  func.func @transform_7(%arg0: i32) -> (i32, i32) {
    %c0_i32 = arith.constant 0 : i32
    %c0_i32_0 = arith.constant 0 : i32
    %c0_i32_1 = arith.constant 0 : i32
    return %c0_i32, %c0_i32_0 : i32, i32
  }
  func.func @transform_8(%arg0: i32) -> (i32, i32, i32) {
    %c0_i32 = arith.constant 0 : i32
    %c0_i32_0 = arith.constant 0 : i32
    %c0_i32_1 = arith.constant 0 : i32
    %c0_i32_2 = arith.constant 0 : i32
    return %c0_i32, %c0_i32_0, %c0_i32_1 : i32, i32, i32
  }
  func.func @transform_9(%arg0: i32) -> (i32, i32) {
    %c0_i32 = arith.constant 0 : i32
    %c0_i32_0 = arith.constant 0 : i32
    %c0_i32_1 = arith.constant 0 : i32
    return %c0_i32, %c0_i32_0 : i32, i32
  }
  func.func @transform_10(%arg0: i32) -> (i32, i32) {
    %c0_i32 = arith.constant 0 : i32
    %c0_i32_0 = arith.constant 0 : i32
    %c0_i32_1 = arith.constant 0 : i32
    return %c0_i32, %c0_i32_0 : i32, i32
  }
  func.func @transform_11(%arg0: i32) -> (i32, i32) {
    %c0_i32 = arith.constant 0 : i32
    %c0_i32_0 = arith.constant 0 : i32
    return %arg0, %c0_i32 : i32, i32
  }
}

</mosaic_0001>

<bundles_post_ra>
// kernel: pixelnet4b_forward.1
= control target key start
LH: loop header
LB: loop body
LE: loop exit
PB: predicated region body
PF: predicated region fallthrough
CT: control target
= control target key end

     0   :  { %16 = vsyncpa [#allocation3], 0  ;;  %s6154_s0 = inlined_call_operand.vmem [shape: bf16[512,64], index: 0, kind: input, shape index: {}]   ;;  %s6155_s1 = inlined_call_operand.vmem [shape: bf16[64,256], index: 1, kind: input, shape index: {}]   ;;  %s6156_s2 = inlined_call_operand.vmem [shape: f32[1,256], index: 2, kind: input, shape index: {}]   ;;  %s6157_s3 = inlined_call_operand.vmem [shape: bf16[4,256], index: 3, kind: input, shape index: {}]   ;;  %s6158_s4 = inlined_call_operand.vmem [shape: bf16[4,256,256], index: 4, kind: input, shape index: {}]   ;;  %s6159_s5 = inlined_call_operand.vmem [shape: f32[4,256], index: 5, kind: input, shape index: {}]   ;;  %s6160_s6 = inlined_call_operand.vmem [shape: f32[4,256], index: 6, kind: input, shape index: {}]   ;;  %s6161_s7 = inlined_call_operand.vmem [shape: f32[4,256], index: 7, kind: input, shape index: {}]   ;;  %s6162_s8 = inlined_call_operand.vmem [shape: bf16[4,256,256], index: 8, kind: input, shape index: {}]   ;;  %s6163_s9 = inlined_call_operand.vmem [shape: bf16[256,256], index: 9, kind: input, shape index: {}]   ;;  %s6164_s10 = inlined_call_operand.vmem [shape: f32[1,256], index: 10, kind: input, shape index: {}]   ;;  %s6165_s11 = inlined_call_operand.hbm [shape: f32[512,256], index: 11, kind: output, shape index: {}]  }
   0x1   :  { %18 = vsyncpa [#allocation3 + $0x1], 0  ;;  %s4658_s17 = smov 0   ;;  %s4660_s18 = smov 0  }
   0x2   :  { %s4662_s19 = smov 0   ;;  %s4664_s20 = smov 0  }
   0x3 LB: > { %s4679_s21 = sadd.s32 4294967295, %s4592_s20   ;;  %s3481_s22 = sadd.s32 4294967294, %s4592_s20   ;;  %s4592_s20 = sphi %s4664_s20, %s6173_s20   ;;  %s4588_s19 = sphi %s4662_s19, %s6172_s19   ;;  %s4584_s18 = sphi %s4660_s18, %s6171_s18   ;;  %s4580_s17 = sphi %s4658_s17, %s6170_s17  }
   0x4   : > { %s4683_s23 = sadd.s32 1, %s4592_s20   ;;  %s267_s24 = sadd.s32 1, %s4588_s19 }
   0x5   : > { %s264_s25 = ssub.s32 %s4592_s20, %s4683_s23  ;;  %p277_p0 = scmp.ne.s32.totalorder %s4588_s19, %s4584_s18 }
   0x6   : > { %p265_p1 = scmp.eq.s32.totalorder %s264_s25, 0  ;;  %p278_p2 = scmp.eq.s32.totalorder %s4679_s21, 1 }
   0x7   : > { %p283_p3 = scmp.ne.s32.totalorder %s4584_s18, %s4580_s17  ;;  %p284_p4 = scmp.eq.s32.totalorder %s3481_s22, 1 }
   0x8   : > { %s4694_s26 = scalar_select %p265_p1, %s4588_s19, %s267_s24  }
   0x9   : > { %p4696_p5 = por %p278_p2, %p277_p0  ;;  %p4700_p6 = por %p284_p4, %p283_p3 }
   0xa   : > { %6166 = sst [smem:[#allocation5_spill]] %s4694_s26  ;;  %p3484_p7 = scmp.ge.s32.totalorder %s4592_s20, 1 }
   0xb   : > { %p341_p8 = scmp.lt.s32.totalorder %s4592_s20, 3 }
   0xd   : > { %p342_p9 = pnand %p3484_p7, %p341_p8 }
   0xe   : > { %v4059_v0 = vld [vmem:[%s6155_s1 + $0x4] ss:$8 sps:$4 sm:$0xff] (!%p342_p9)   ;;  %s3486_s12 = sshll.u32 (!%p342_p9), %s4679_s21, 5  ;;  %v4061_v1 = vld [vmem:[%s6155_s1] ss:$8 sps:$4 sm:$0xff] (!%p342_p9)   ;;  %v4594_v2 = vmov (!%p342_p9), 0   ;;  %v431_v25 = vlaneseq (!%p342_p9) }
   0xf   : > { %345 = sbr.rel (%p342_p9) target bundleno = 2217 (0x8a9), region = 64  ;;  %642 = vmatprep.mubr.bf16.mxu0 (!%p342_p9), %v4594_v2  ;;  %p382_p10 = scmp.lt.s32.totalorder (!%p342_p9), %s3486_s12, 63  ;;  %610 = vmatprep.subr.bf16.mxu0 (!%p342_p9), %v4059_v0  ;;  %v4062_v3 = vld [vmem:[%s6155_s1 + $0x14] ss:$8 sps:$4 sm:$0xff] (!%p342_p9)   ;;  %v4064_v4 = vld [vmem:[%s6155_s1 + $0x10] ss:$8 sps:$4 sm:$0xff] (!%p342_p9)  }
  0x10   : > { %611 = vmatpush1.bf16.msra.mxu0 (!%p342_p9), %v4061_v1  ;;  %v4065_v5 = vld [vmem:[%s6155_s1 + $0x24] ss:$8 sps:$4 sm:$0xff] (!%p342_p9)   ;;  %v4067_v6 = vld [vmem:[%s6155_s1 + $0x20] ss:$8 sps:$4 sm:$0xff] (!%p342_p9)   ;;  %v4068_v7 = vld [vmem:[%s6155_s1 + $0x34] ss:$8 sps:$4 sm:$0xff] (!%p342_p9)  }
  0x11   : > { %612 = vmatprep.subr.bf16.mxu0 (!%p342_p9), %v4062_v3  ;;  %v4070_v8 = vld [vmem:[%s6155_s1 + $0x30] ss:$8 sps:$4 sm:$0xff] (!%p342_p9)   ;;  %vm561_vm0 = vcmask (!%p342_p9), 523264   ;;  %v4784_v26 = vshrl.u32 (!%p342_p9), %v431_v25, 7  ;;  %v429_v28 = vld [vmem:[%s6156_s2] sm:$0x3] (!%p342_p9) }
  0x12   : > { %v4803_v35 = vld.sshfl [vmem:[%s6157_s3] sm:$0x33 pattern:$0x76325410] (!%p342_p9)  ;;  %vm892_vm1 = vcmask (!%p342_p9), 1043456   ;;  %vm1928_vm2 = vcmask (!%p342_p9), 1040384  }
  0x13   : > { %v4787_v27 = vsub.s32 (!%p342_p9), 0, %v4784_v26  ;;  %v437_v29 = vsub.s32 (!%p342_p9), 1, %v4784_v26  ;;  %v848_v39 = vcombine.high (!%p342_p9), %v4803_v35, %v4803_v35  ;;  %vm1931_vm3 = vcmask (!%p342_p9), 1041408   ;;  %s378_s15 = sand.u32 (!%p342_p9), 1, %s4584_s18   ;;  %s4016_s24 = sshll.u32 (!%p342_p9), %s4679_s21, 13 }
  0x14   : > { %613 = vmatpush1.bf16.msra.mxu0 (!%p342_p9), %v4064_v4  ;;  %vm1934_vm4 = vcmask (!%p342_p9), 1042432   ;;  %s3485_s16 = sshll.u32 (!%p342_p9), %s378_s15, 9  ;;  %s6113_s21 = scalar_lea.sflag (!%p342_p9), [#allocation3], %s378_s15 }
  0x15   : > { %614 = vmatprep.subr.bf16.mxu0 (!%p342_p9), %v4065_v5  ;;  %v4794_v30 = vrot.slane (!%p342_p9), %v429_v28, %v4787_v27  ;;  %v4798_v32 = vrot.slane (!%p342_p9), %v429_v28, %v437_v29  ;;  %s5974_s22 = scalar_lea.vmem (!%p342_p9), [#allocation2], %s3485_s16  ;;  %s4595_s13 = smov (!%p342_p9), [#allocation2]  }
  0x16   : > { %s6175_s12 = smov (!%p382_p10, %s3486_s12), 63  ;;  %s4534_s14 = sshll.u32 %s4595_s13, 4  ;;  %s4535_s14 = int_to_ptr.vmem [resolvable:$false] %s4534_s14 }
  0x17   : > { %s3487_s30 = sshll.u32 %s6175_s12, 2  ;;  %s3419_s12 = sshll.u32 %s5974_s22, 4  ;;  %s6105_s12 = int_to_ptr.vmem [resolvable:$true] %s3419_s12 }
  0x18   : > { %s4726_s26 = scalar_lea.vmem %s6154_s0, %s3487_s30  ;;  %615 = vmatpush1.bf16.msra.mxu0 %v4067_v6  ;;  %s6103_s30 = scalar_lea.hbm %s6165_s11, %s4016_s24 }
  0x19   : > { %616 = vmatprep.subr.bf16.mxu0 %v4068_v7  ;;  %v4071_v9 = vld [vmem:[%s4726_s26] sm:$0xff]   ;;  %v4072_v10 = vld [vmem:[%s4726_s26 + $0x8] sm:$0xff]   ;;  %v4073_v11 = vld [vmem:[%s4726_s26 + $0x10] sm:$0xff]   ;;  %s4536_s16 = scalar_lea.vmem %s4535_s14, 16384  ;;  %p4537_p0 = scmp.lt.s32.totalorder %s6105_s12, %s4535_s14 }
  0x1a   : > { %v4074_v12 = vld [vmem:[%s4726_s26 + $0x18] sm:$0xff]   ;;  %v4075_v13 = vld [vmem:[%s4726_s26 + $0x20] sm:$0xff]   ;;  %v4076_v14 = vld [vmem:[%s4726_s26 + $0x28] sm:$0xff]  }
  0x1b   : > { %v4077_v15 = vld [vmem:[%s4726_s26 + $0x30] sm:$0xff]   ;;  %v4078_v16 = vld [vmem:[%s4726_s26 + $0x38] sm:$0xff]   ;;  %v4079_v17 = vld [vmem:[%s4726_s26 + $0x40] sm:$0xff]  }
  0x1c   : > { %617 = vmatpush1.bf16.msra.mxu0 %v4070_v8  ;;  %v4080_v18 = vld [vmem:[%s4726_s26 + $0x48] sm:$0xff]   ;;  %v4081_v19 = vld [vmem:[%s4726_s26 + $0x50] sm:$0xff]   ;;  %v4082_v20 = vld [vmem:[%s4726_s26 + $0x58] sm:$0xff]  }
  0x1d   : > { %v4083_v21 = vld [vmem:[%s4726_s26 + $0x60] sm:$0xff]   ;;  %v4084_v22 = vld [vmem:[%s4726_s26 + $0x68] sm:$0xff]   ;;  %v4085_v23 = vld [vmem:[%s4726_s26 + $0x70] sm:$0xff]  }
  0x1e   : > { %v4086_v24 = vld [vmem:[%s4726_s26 + $0x78] sm:$0xff]   ;;  %s4530_s26 = scalar_lea.vmem %s6105_s12, 8192 }
  0x1f   : > { %3512 = vmatmul.mubr.msk.bf16.vlgmr.msra.gmra.mrb[0].mxu0 %vm561_vm0, %v4071_v9  ;;  %p4531_p11 = scmp.ne.s32.totalorder %s6105_s12, %s4530_s26  ;;  %p4538_p1 = scmp.lt.s32.totalorder %s4536_s16, %s4530_s26 }
  0x20   : > { %652 = vmatprep.mubr.bf16.mxu0 %v4594_v2 }
  0x21   : > { %p4532_p12 = pnand %p4531_p11, %p4696_p5  ;;  %p4539_p2 = por %p4538_p1, %p4537_p0 }
  0x23   : > { %p4533_p13 = pneg %p4532_p12 }
  0x25   : > { %p4540_p3 = pnand %p4539_p2, %p4533_p13 }
  0x27   : > { %3513 = vmatmul.mubr.msk.bf16.gmra.mrb[4].mxu0 %vm561_vm0, %v4072_v10 }
  0x28   : > { %662 = vmatprep.mubr.bf16.mxu0 %v4594_v2 }
  0x2f   : > { %3514 = vmatmul.mubr.msk.bf16.gmra.mrb[8].mxu0 %vm561_vm0, %v4073_v11 }
  0x30   : > { %672 = vmatprep.mubr.bf16.mxu0 %v4594_v2 }
  0x37   : > { %3515 = vmatmul.mubr.msk.bf16.gmra.mrb[12].mxu0 %vm561_vm0, %v4074_v12 }
  0x38   : > { %682 = vmatprep.mubr.bf16.mxu0 %v4594_v2 }
  0x3f   : > { %3516 = vmatmul.mubr.msk.bf16.gmra.mrb[16].mxu0 %vm561_vm0, %v4075_v13 }
  0x40   : > { %692 = vmatprep.mubr.bf16.mxu0 %v4594_v2 }
  0x47   : > { %3517 = vmatmul.mubr.msk.bf16.gmra.mrb[20].mxu0 %vm561_vm0, %v4076_v14 }
  0x48   : > { %702 = vmatprep.mubr.bf16.mxu0 %v4594_v2 }
  0x4f   : > { %3518 = vmatmul.mubr.msk.bf16.gmra.mrb[24].mxu0 %vm561_vm0, %v4077_v15 }
  0x50   : > { %712 = vmatprep.mubr.bf16.mxu0 %v4594_v2 }
  0x57   : > { %3519 = vmatmul.mubr.msk.bf16.gmra.mrb[28].mxu0 %vm561_vm0, %v4078_v16 }
  0x58   : > { %722 = vmatprep.mubr.bf16.mxu0 %v4594_v2 }
  0x5f   : > { %3520 = vmatmul.mubr.msk.bf16.gmra.mrb[32].mxu0 %vm561_vm0, %v4079_v17 }
  0x60   : > { %732 = vmatprep.mubr.bf16.mxu0 %v4594_v2 }
  0x67   : > { %3521 = vmatmul.mubr.msk.bf16.gmra.mrb[36].mxu0 %vm561_vm0, %v4080_v18 }
  0x68   : > { %742 = vmatprep.mubr.bf16.mxu0 %v4594_v2 }
  0x6f   : > { %3522 = vmatmul.mubr.msk.bf16.gmra.mrb[40].mxu0 %vm561_vm0, %v4081_v19 }
  0x70   : > { %752 = vmatprep.mubr.bf16.mxu0 %v4594_v2 }
  0x77   : > { %3523 = vmatmul.mubr.msk.bf16.gmra.mrb[44].mxu0 %vm561_vm0, %v4082_v20 }
  0x78   : > { %762 = vmatprep.mubr.bf16.mxu0 %v4594_v2 }
  0x7f   : > { %3524 = vmatmul.mubr.msk.bf16.gmra.mrb[48].mxu0 %vm561_vm0, %v4083_v21 }
  0x80   : > { %772 = vmatprep.mubr.bf16.mxu0 %v4594_v2 }
  0x87   : > { %3525 = vmatmul.mubr.msk.bf16.gmra.mrb[52].mxu0 %vm561_vm0, %v4084_v22 }
  0x88   : > { %782 = vmatprep.mubr.bf16.mxu0 %v4594_v2 }
  0x8f   : > { %3526 = vmatmul.mubr.msk.bf16.gmra.mrb[56].mxu0 %vm561_vm0, %v4085_v23 }
  0x90   : > { %792 = vmatprep.mubr.bf16.mxu0 %v4594_v2 }
  0x97   : > { %3527 = vmatmul.mubr.msk.bf16.gmra.mrb[60].mxu0 %vm561_vm0, %v4086_v24 }
  0x98   : > { %883 = vmatprep.mubr.bf16.mxu0 %v848_v39 }
  0xf2   : > { %v644_v31 = vpop.f32.mrb[0].mxu0 }
  0xf3   : > { %v646_v33 = vpop.f32.mrb[1].mxu0  ;;  %v645_v36 = vadd.f32 %v644_v31, %v4794_v30 }
  0xf4   : > { %v648_v34 = vpop.f32.mrb[2].mxu0  ;;  %v647_v40 = vadd.f32 %v646_v33, %v4798_v32 }
  0xf5   : > { %v649_v37 = vadd.f32 %v648_v34, %v4794_v30  ;;  %v650_v38 = vpop.f32.mrb[3].mxu0 }
  0xf6   : > { %v651_v41 = vadd.f32 %v650_v38, %v4798_v32 }
  0xf7   : > { %v4811_v42 = vpack.c.bf16 %v649_v37, %v645_v36 }
  0xf8   : > { %v4813_v43 = vpack.c.bf16 %v651_v41, %v647_v40 }
  0xfa   : > { %v654_v44 = vpop.f32.mrb[4].mxu0  ;;  %851 = vmatprep.subr.bf16.mxu0 %v4813_v43 }
  0xfb   : > { %v656_v45 = vpop.f32.mrb[5].mxu0  ;;  %852 = vmatpush1.bf16.xpose.msra.mxu0 %v4811_v42  ;;  %v655_v47 = vadd.f32 %v654_v44, %v4794_v30 }
  0xfc   : > { %v658_v46 = vpop.f32.mrb[6].mxu0  ;;  %v657_v50 = vadd.f32 %v656_v45, %v4798_v32 }
  0xfd   : > { %v659_v48 = vadd.f32 %v658_v46, %v4794_v30  ;;  %v660_v49 = vpop.f32.mrb[7].mxu0 }
  0xfe   : > { %v661_v51 = vadd.f32 %v660_v49, %v4798_v32 }
  0xff   : > { %v4821_v52 = vpack.c.bf16 %v659_v48, %v655_v47 }
 0x100   : > { %v4823_v53 = vpack.c.bf16 %v661_v51, %v657_v50 }
 0x102   : > { %v664_v54 = vpop.f32.mrb[8].mxu0  ;;  %853 = vmatprep.subr.bf16.mxu0 %v4823_v53 }
 0x103   : > { %v666_v55 = vpop.f32.mrb[9].mxu0  ;;  %854 = vmatpush1.bf16.xpose.msra.mxu0 %v4821_v52  ;;  %v665_v57 = vadd.f32 %v664_v54, %v4794_v30 }
 0x104   : > { %v668_v56 = vpop.f32.mrb[10].mxu0  ;;  %v667_v60 = vadd.f32 %v666_v55, %v4798_v32 }
 0x105   : > { %v669_v58 = vadd.f32 %v668_v56, %v4794_v30  ;;  %v670_v59 = vpop.f32.mrb[11].mxu0 }
 0x106   : > { %v671_v61 = vadd.f32 %v670_v59, %v4798_v32 }
 0x107   : > { %v4831_v62 = vpack.c.bf16 %v669_v58, %v665_v57 }
 0x108   : > { %v4833_v63 = vpack.c.bf16 %v671_v61, %v667_v60 }
 0x10a   : > { %v674_v0 = vpop.f32.mrb[12].mxu0  ;;  %855 = vmatprep.subr.bf16.mxu0 %v4833_v63 }
 0x10b   : > { %v676_v1 = vpop.f32.mrb[13].mxu0  ;;  %856 = vmatpush1.bf16.xpose.msra.mxu0 %v4831_v62  ;;  %v675_v3 = vadd.f32 %v674_v0, %v4794_v30 }
 0x10c   : > { %v678_v2 = vpop.f32.mrb[14].mxu0  ;;  %v677_v6 = vadd.f32 %v676_v1, %v4798_v32 }
 0x10d   : > { %v679_v4 = vadd.f32 %v678_v2, %v4794_v30  ;;  %v680_v5 = vpop.f32.mrb[15].mxu0 }
 0x10e   : > { %v681_v7 = vadd.f32 %v680_v5, %v4798_v32 }
 0x10f   : > { %v4841_v8 = vpack.c.bf16 %v679_v4, %v675_v3 }
 0x110   : > { %v4843_v9 = vpack.c.bf16 %v681_v7, %v677_v6 }
 0x112   : > { %v684_v10 = vpop.f32.mrb[16].mxu0  ;;  %857 = vmatprep.subr.bf16.mxu0 %v4843_v9 }
 0x113   : > { %v686_v11 = vpop.f32.mrb[17].mxu0  ;;  %858 = vmatpush1.bf16.xpose.msra.mxu0 %v4841_v8  ;;  %v685_v13 = vadd.f32 %v684_v10, %v4794_v30 }
 0x114   : > { %v688_v12 = vpop.f32.mrb[18].mxu0  ;;  %v687_v16 = vadd.f32 %v686_v11, %v4798_v32 }
 0x115   : > { %v689_v14 = vadd.f32 %v688_v12, %v4794_v30  ;;  %v690_v15 = vpop.f32.mrb[19].mxu0 }
 0x116   : > { %v691_v17 = vadd.f32 %v690_v15, %v4798_v32 }
 0x117   : > { %v4851_v18 = vpack.c.bf16 %v689_v14, %v685_v13 }
 0x118   : > { %v4853_v19 = vpack.c.bf16 %v691_v17, %v687_v16 }
 0x11a   : > { %v694_v20 = vpop.f32.mrb[20].mxu0  ;;  %859 = vmatprep.subr.bf16.mxu0 %v4853_v19 }
 0x11b   : > { %v696_v21 = vpop.f32.mrb[21].mxu0  ;;  %860 = vmatpush1.bf16.xpose.msra.mxu0 %v4851_v18  ;;  %v695_v23 = vadd.f32 %v694_v20, %v4794_v30 }
 0x11c   : > { %v698_v22 = vpop.f32.mrb[22].mxu0  ;;  %v697_v28 = vadd.f32 %v696_v21, %v4798_v32 }
 0x11d   : > { %v699_v24 = vadd.f32 %v698_v22, %v4794_v30  ;;  %v700_v25 = vpop.f32.mrb[23].mxu0 }
 0x11e   : > { %v701_v31 = vadd.f32 %v700_v25, %v4798_v32 }
 0x11f   : > { %v4861_v33 = vpack.c.bf16 %v699_v24, %v695_v23 }
 0x120   : > { %v4863_v34 = vpack.c.bf16 %v701_v31, %v697_v28 }
 0x122   : > { %v704_v36 = vpop.f32.mrb[24].mxu0  ;;  %861 = vmatprep.subr.bf16.mxu0 %v4863_v34 }
 0x123   : > { %v706_v37 = vpop.f32.mrb[25].mxu0  ;;  %862 = vmatpush1.bf16.xpose.msra.mxu0 %v4861_v33  ;;  %v705_v39 = vadd.f32 %v704_v36, %v4794_v30 }
 0x124   : > { %v708_v38 = vpop.f32.mrb[26].mxu0  ;;  %v707_v44 = vadd.f32 %v706_v37, %v4798_v32 }
 0x125   : > { %v709_v40 = vadd.f32 %v708_v38, %v4794_v30  ;;  %v710_v41 = vpop.f32.mrb[27].mxu0 }
 0x126   : > { %v711_v45 = vadd.f32 %v710_v41, %v4798_v32 }
 0x127   : > { %v4871_v46 = vpack.c.bf16 %v709_v40, %v705_v39 }
 0x128   : > { %v4873_v47 = vpack.c.bf16 %v711_v45, %v707_v44 }
 0x12a   : > { %v714_v48 = vpop.f32.mrb[28].mxu0  ;;  %863 = vmatprep.subr.bf16.mxu0 %v4873_v47 }
 0x12b   : > { %v716_v49 = vpop.f32.mrb[29].mxu0  ;;  %864 = vmatpush1.bf16.xpose.msra.mxu0 %v4871_v46  ;;  %v715_v51 = vadd.f32 %v714_v48, %v4794_v30 }
 0x12c   : > { %v718_v50 = vpop.f32.mrb[30].mxu0  ;;  %v717_v56 = vadd.f32 %v716_v49, %v4798_v32 }
 0x12d   : > { %v719_v54 = vadd.f32 %v718_v50, %v4794_v30  ;;  %v720_v55 = vpop.f32.mrb[31].mxu0 }
 0x12e   : > { %v721_v57 = vadd.f32 %v720_v55, %v4798_v32 }
 0x12f   : > { %v4881_v58 = vpack.c.bf16 %v719_v54, %v715_v51 }
 0x130   : > { %v4883_v59 = vpack.c.bf16 %v721_v57, %v717_v56 }
 0x132   : > { %v724_v60 = vpop.f32.mrb[32].mxu0  ;;  %865 = vmatprep.subr.bf16.mxu0 %v4883_v59 }
 0x133   : > { %v726_v61 = vpop.f32.mrb[33].mxu0  ;;  %866 = vmatpush1.bf16.xpose.msra.mxu0 %v4881_v58  ;;  %v725_v1 = vadd.f32 %v724_v60, %v4794_v30 }
 0x134   : > { %v728_v0 = vpop.f32.mrb[34].mxu0  ;;  %v727_v4 = vadd.f32 %v726_v61, %v4798_v32 }
 0x135   : > { %v729_v2 = vadd.f32 %v728_v0, %v4794_v30  ;;  %v730_v3 = vpop.f32.mrb[35].mxu0 }
 0x136   : > { %v731_v5 = vadd.f32 %v730_v3, %v4798_v32 }
 0x137   : > { %v4891_v6 = vpack.c.bf16 %v729_v2, %v725_v1 }
 0x138   : > { %v4893_v7 = vpack.c.bf16 %v731_v5, %v727_v4 }
 0x13a   : > { %v734_v10 = vpop.f32.mrb[36].mxu0  ;;  %867 = vmatprep.subr.bf16.mxu0 %v4893_v7 }
 0x13b   : > { %v736_v11 = vpop.f32.mrb[37].mxu0  ;;  %868 = vmatpush1.bf16.xpose.msra.mxu0 %v4891_v6  ;;  %v735_v13 = vadd.f32 %v734_v10, %v4794_v30 }
 0x13c   : > { %v738_v12 = vpop.f32.mrb[38].mxu0  ;;  %v737_v16 = vadd.f32 %v736_v11, %v4798_v32 }
 0x13d   : > { %v739_v14 = vadd.f32 %v738_v12, %v4794_v30  ;;  %v740_v15 = vpop.f32.mrb[39].mxu0 }
 0x13e   : > { %v741_v17 = vadd.f32 %v740_v15, %v4798_v32 }
 0x13f   : > { %v4901_v20 = vpack.c.bf16 %v739_v14, %v735_v13 }
 0x140   : > { %v4903_v21 = vpack.c.bf16 %v741_v17, %v737_v16 }
 0x142   : > { %v744_v22 = vpop.f32.mrb[40].mxu0  ;;  %869 = vmatprep.subr.bf16.mxu0 %v4903_v21 }
 0x143   : > { %v746_v23 = vpop.f32.mrb[41].mxu0  ;;  %870 = vmatpush1.bf16.xpose.msra.mxu0 %v4901_v20  ;;  %v745_v25 = vadd.f32 %v744_v22, %v4794_v30 }
 0x144   : > { %v748_v24 = vpop.f32.mrb[42].mxu0  ;;  %v747_v36 = vadd.f32 %v746_v23, %v4798_v32 }
 0x145   : > { %v749_v28 = vadd.f32 %v748_v24, %v4794_v30  ;;  %v750_v31 = vpop.f32.mrb[43].mxu0 }
 0x146   : > { %v751_v37 = vadd.f32 %v750_v31, %v4798_v32 }
 0x147   : > { %v4911_v38 = vpack.c.bf16 %v749_v28, %v745_v25 }
 0x148   : > { %v4913_v39 = vpack.c.bf16 %v751_v37, %v747_v36 }
 0x14a   : > { %v754_v40 = vpop.f32.mrb[44].mxu0  ;;  %871 = vmatprep.subr.bf16.mxu0 %v4913_v39 }
 0x14b   : > { %v756_v41 = vpop.f32.mrb[45].mxu0  ;;  %872 = vmatpush1.bf16.xpose.msra.mxu0 %v4911_v38  ;;  %v755_v45 = vadd.f32 %v754_v40, %v4794_v30 }
 0x14c   : > { %v758_v44 = vpop.f32.mrb[46].mxu0  ;;  %v757_v50 = vadd.f32 %v756_v41, %v4798_v32 }
 0x14d   : > { %v759_v48 = vadd.f32 %v758_v44, %v4794_v30  ;;  %v760_v49 = vpop.f32.mrb[47].mxu0 }
 0x14e   : > { %v761_v51 = vadd.f32 %v760_v49, %v4798_v32 }
 0x14f   : > { %v4921_v54 = vpack.c.bf16 %v759_v48, %v755_v45 }
 0x150   : > { %v4923_v55 = vpack.c.bf16 %v761_v51, %v757_v50 }
 0x152   : > { %v764_v56 = vpop.f32.mrb[48].mxu0  ;;  %873 = vmatprep.subr.bf16.mxu0 %v4923_v55 }
 0x153   : > { %v766_v57 = vpop.f32.mrb[49].mxu0  ;;  %874 = vmatpush1.bf16.xpose.msra.mxu0 %v4921_v54  ;;  %v765_v61 = vadd.f32 %v764_v56, %v4794_v30 }
 0x154   : > { %v768_v60 = vpop.f32.mrb[50].mxu0  ;;  %v767_v2 = vadd.f32 %v766_v57, %v4798_v32 }
 0x155   : > { %v769_v0 = vadd.f32 %v768_v60, %v4794_v30  ;;  %v770_v1 = vpop.f32.mrb[51].mxu0 }
 0x156   : > { %v771_v3 = vadd.f32 %v770_v1, %v4798_v32 }
 0x157   : > { %v4931_v4 = vpack.c.bf16 %v769_v0, %v765_v61 }
 0x158   : > { %v4933_v5 = vpack.c.bf16 %v771_v3, %v767_v2 }
 0x15a   : > { %v774_v10 = vpop.f32.mrb[52].mxu0  ;;  %875 = vmatprep.subr.bf16.mxu0 %v4933_v5 }
 0x15b   : > { %v776_v11 = vpop.f32.mrb[53].mxu0  ;;  %876 = vmatpush1.bf16.xpose.msra.mxu0 %v4931_v4  ;;  %v775_v13 = vadd.f32 %v774_v10, %v4794_v30 }
 0x15c   : > { %v778_v12 = vpop.f32.mrb[54].mxu0  ;;  %v777_v16 = vadd.f32 %v776_v11, %v4798_v32 }
 0x15d   : > { %v779_v14 = vadd.f32 %v778_v12, %v4794_v30  ;;  %v780_v15 = vpop.f32.mrb[55].mxu0 }
 0x15e   : > { %v781_v17 = vadd.f32 %v780_v15, %v4798_v32 }
 0x15f   : > { %v4941_v22 = vpack.c.bf16 %v779_v14, %v775_v13 }
 0x160   : > { %v4943_v23 = vpack.c.bf16 %v781_v17, %v777_v16 }
 0x162   : > { %v784_v24 = vpop.f32.mrb[56].mxu0  ;;  %877 = vmatprep.subr.bf16.mxu0 %v4943_v23 }
 0x163   : > { %v786_v25 = vpop.f32.mrb[57].mxu0  ;;  %878 = vmatpush1.bf16.xpose.msra.mxu0 %v4941_v22  ;;  %v785_v31 = vadd.f32 %v784_v24, %v4794_v30 }
 0x164   : > { %v788_v28 = vpop.f32.mrb[58].mxu0  ;;  %v787_v40 = vadd.f32 %v786_v25, %v4798_v32 }
 0x165   : > { %v789_v36 = vadd.f32 %v788_v28, %v4794_v30  ;;  %v790_v37 = vpop.f32.mrb[59].mxu0 }
 0x166   : > { %v791_v41 = vadd.f32 %v790_v37, %v4798_v32  ;;  %v4089_v37 = vld [vmem:[%s6158_s4] ss:$8 sps:$4 sm:$0xff]  }
 0x167   : > { %v4951_v44 = vpack.c.bf16 %v789_v36, %v785_v31  ;;  %v4087_v36 = vld [vmem:[%s6158_s4 + $0x4] ss:$8 sps:$4 sm:$0xff]  }
 0x168   : > { %v4953_v45 = vpack.c.bf16 %v791_v41, %v787_v40  ;;  %v4092_v40 = vld [vmem:[%s6158_s4 + $0x104] ss:$8 sps:$4 sm:$0xff]   ;;  %v4093_v41 = vld [vmem:[%s6158_s4 + $0x14] ss:$8 sps:$4 sm:$0xff]   ;;  %1149 = vmatprep.subr.bf16.mxu1 %v4087_v36 }
 0x169   : > { %1150 = vmatpush1.bf16.msra.mxu1 %v4089_v37  ;;  %v4165_v36 = vld [vmem:[%s6158_s4 + $0xd4] ss:$8 sps:$4 sm:$0xff]   ;;  %v4167_v37 = vld [vmem:[%s6158_s4 + $0xd0] ss:$8 sps:$4 sm:$0xff]  }
 0x16a   : > { %v794_v48 = vpop.f32.mrb[60].mxu0  ;;  %879 = vmatprep.subr.bf16.mxu0 %v4953_v45  ;;  %1151 = vmatprep.subr.bf16.mxu1 %v4093_v41  ;;  %v4173_v41 = vld [vmem:[%s6158_s4 + $0xe0] ss:$8 sps:$4 sm:$0xff]  }
 0x16b   : > { %v796_v49 = vpop.f32.mrb[61].mxu0  ;;  %880 = vmatpush1.bf16.xpose.msra.mxu0 %v4951_v44  ;;  %v795_v51 = vadd.f32 %v794_v48, %v4794_v30  ;;  %v4095_v48 = vld [vmem:[%s6158_s4 + $0x10] ss:$8 sps:$4 sm:$0xff]  }
 0x16c   : > { %v798_v50 = vpop.f32.mrb[62].mxu0  ;;  %v797_v60 = vadd.f32 %v796_v49, %v4798_v32  ;;  %v4099_v49 = vld [vmem:[%s6158_s4 + $0x24] ss:$8 sps:$4 sm:$0xff]  }
 0x16d   : > { %v799_v56 = vadd.f32 %v798_v50, %v4794_v30  ;;  %v800_v57 = vpop.f32.mrb[63].mxu0  ;;  %1152 = vmatpush1.bf16.msra.mxu1 %v4095_v48  ;;  %v4101_v50 = vld [vmem:[%s6158_s4 + $0x20] ss:$8 sps:$4 sm:$0xff]  }
 0x16e   : > { %v801_v61 = vadd.f32 %v800_v57, %v4798_v32  ;;  %1153 = vmatprep.subr.bf16.mxu1 %v4099_v49  ;;  %v4111_v57 = vld [vmem:[%s6158_s4 + $0x44] ss:$8 sps:$4 sm:$0xff]  }
 0x16f   : > { %v4961_v0 = vpack.c.bf16 %v799_v56, %v795_v51  ;;  %v4105_v51 = vld [vmem:[%s6158_s4 + $0x34] ss:$8 sps:$4 sm:$0xff]   ;;  %v4107_v56 = vld [vmem:[%s6158_s4 + $0x30] ss:$8 sps:$4 sm:$0xff]  }
 0x170   : > { %v4963_v1 = vpack.c.bf16 %v801_v61, %v797_v60  ;;  %v4113_v60 = vld [vmem:[%s6158_s4 + $0x40] ss:$8 sps:$4 sm:$0xff]   ;;  %v4117_v61 = vld [vmem:[%s6158_s4 + $0x54] ss:$8 sps:$4 sm:$0xff]  }
 0x171   : > { %1154 = vmatpush1.bf16.msra.mxu1 %v4101_v50 }
 0x172   : > { %881 = vmatprep.subr.bf16.mxu0 %v4963_v1  ;;  %1155 = vmatprep.subr.bf16.mxu1 %v4105_v51 }
 0x173   : > { %882 = vmatpush1.bf16.xpose.msra.mxu0 %v4961_v0 }
 0x174   : > { %914 = vmatprep.subr.bf16.mxu0 %v4813_v43 }
 0x175   : > { %1156 = vmatpush1.bf16.msra.mxu1 %v4107_v56 }
 0x176   : > { %1157 = vmatprep.subr.bf16.mxu1 %v4111_v57 }
 0x179   : > { %1158 = vmatpush1.bf16.msra.mxu1 %v4113_v60  ;;  %v4090_v60 = vld [vmem:[%s6158_s4 + $0x100] ss:$8 sps:$4 sm:$0xff]  }
 0x17a   : > { %884 = vmatmul.mubr.bf16.vlgmr.msra.gmra.mrb[64].mxu0 %v4803_v35  ;;  %1159 = vmatprep.subr.bf16.mxu1 %v4117_v61  ;;  %v4098_v61 = vld [vmem:[%s6158_s4 + $0x114] ss:$8 sps:$4 sm:$0xff]  }
 0x17b   : > { %915 = vmatpush1.bf16.msra.mxu0 %v4811_v42 }
 0x17c   : > { %916 = vmatprep.subr.bf16.mxu0 %v4823_v53 }
 0x17f   : > { %917 = vmatpush1.bf16.msra.mxu0 %v4821_v52 }
 0x180   : > { %918 = vmatprep.subr.bf16.mxu0 %v4833_v63 }
 0x183   : > { %919 = vmatpush1.bf16.msra.mxu0 %v4831_v62 }
 0x184   : > { %920 = vmatprep.subr.bf16.mxu0 %v4843_v9 }
 0x187   : > { %921 = vmatpush1.bf16.msra.mxu0 %v4841_v8 }
 0x188   : > { %922 = vmatprep.subr.bf16.mxu0 %v4853_v19 }
 0x18b   : > { %923 = vmatpush1.bf16.msra.mxu0 %v4851_v18 }
 0x18c   : > { %924 = vmatprep.subr.bf16.mxu0 %v4863_v34 }
 0x18f   : > { %925 = vmatpush1.bf16.msra.mxu0 %v4861_v33 }
 0x190   : > { %926 = vmatprep.subr.bf16.mxu0 %v4873_v47 }
 0x193   : > { %927 = vmatpush1.bf16.msra.mxu0 %v4871_v46 }
 0x194   : > { %928 = vmatprep.subr.bf16.mxu0 %v4883_v59 }
 0x197   : > { %929 = vmatpush1.bf16.msra.mxu0 %v4881_v58 }
 0x198   : > { %930 = vmatprep.subr.bf16.mxu0 %v4893_v7 }
 0x19b   : > { %931 = vmatpush1.bf16.msra.mxu0 %v4891_v6 }
 0x19c   : > { %932 = vmatprep.subr.bf16.mxu0 %v4903_v21 }
 0x19f   : > { %933 = vmatpush1.bf16.msra.mxu0 %v4901_v20 }
 0x1a0   : > { %934 = vmatprep.subr.bf16.mxu0 %v4913_v39 }
 0x1a3   : > { %935 = vmatpush1.bf16.msra.mxu0 %v4911_v38 }
 0x1a4   : > { %936 = vmatprep.subr.bf16.mxu0 %v4923_v55 }
 0x1a7   : > { %937 = vmatpush1.bf16.msra.mxu0 %v4921_v54 }
 0x1a8   : > { %938 = vmatprep.subr.bf16.mxu0 %v4933_v5 }
 0x1ab   : > { %939 = vmatpush1.bf16.msra.mxu0 %v4931_v4 }
 0x1ac   : > { %940 = vmatprep.subr.bf16.mxu0 %v4943_v23 }
 0x1af   : > { %941 = vmatpush1.bf16.msra.mxu0 %v4941_v22 }
 0x1b0   : > { %942 = vmatprep.subr.bf16.mxu0 %v4953_v45 }
 0x1b3   : > { %943 = vmatpush1.bf16.msra.mxu0 %v4951_v44 }
 0x1b4   : > { %944 = vmatprep.subr.bf16.mxu0 %v4963_v1 }
 0x1b7   : > { %945 = vmatpush1.bf16.msra.mxu0 %v4961_v0 }
 0x1b8   : > { %1391 = vmatprep.subr.bf16.mxu0 %v4092_v40  ;;  %v4171_v40 = vld [vmem:[%s6158_s4 + $0xe4] ss:$8 sps:$4 sm:$0xff]  }
 0x24d   : > { %v885_v30 = vpop.f32.mrb[64].mxu0 }
 0x24e   : > { %v887_v32 = vpop.f32.mrb[65].mxu0  ;;  %v893_v35 = vsel %vm892_vm1, %v885_v30, -inf }
 0x24f   : > { %v889_v2 = vpop.f32.mrb[66].mxu0  ;;  %v894_v3 = vsel %vm892_vm1, %v887_v32, -inf }
 0x250   : > { %v890_v10 = vpop.f32.mrb[67].mxu0  ;;  %v895_v11 = vmax.f32 %v893_v35, %v894_v3  ;;  %v4125_v35 = vld [vmem:[%s6158_s4 + $0x60] ss:$8 sps:$4 sm:$0xff]   ;;  %v4129_v2 = vld [vmem:[%s6158_s4 + $0x74] ss:$8 sps:$4 sm:$0xff]  }
 0x251   : > { %v4131_v3 = vld [vmem:[%s6158_s4 + $0x70] ss:$8 sps:$4 sm:$0xff]   ;;  %v4135_v10 = vld [vmem:[%s6158_s4 + $0x84] ss:$8 sps:$4 sm:$0xff]  }
 0x252   : > { %896 = vmax.xlane.f32.xlu0 %v895_v11  ;;  %v4137_v11 = vld [vmem:[%s6158_s4 + $0x80] ss:$8 sps:$4 sm:$0xff]  }
 0x2df   : > { %v897_v12 = vpop.xlane.xlu0 %896 }
 0x2e0   : > { %v898_v13 = vsub.f32 %v885_v30, %v897_v12  ;;  %v899_v14 = vsub.f32 %v887_v32, %v897_v12  ;;  %v4119_v30 = vld [vmem:[%s6158_s4 + $0x50] ss:$8 sps:$4 sm:$0xff]   ;;  %v4123_v32 = vld [vmem:[%s6158_s4 + $0x64] ss:$8 sps:$4 sm:$0xff]   ;;  %v4141_v12 = vld [vmem:[%s6158_s4 + $0x94] ss:$8 sps:$4 sm:$0xff]  }
 0x2e1   : > { %1160 = vmatpush1.bf16.msra.mxu1 %v4119_v30  ;;  %v4096_v30 = vld [vmem:[%s6158_s4 + $0x110] ss:$8 sps:$4 sm:$0xff]  }
 0x2e2   : > { %v900_v15 = vmul.f32 1.442695, %v898_v13  ;;  %v902_v16 = vmul.f32 1.442695, %v899_v14  ;;  %1161 = vmatprep.subr.bf16.mxu1 %v4123_v32  ;;  %v4143_v13 = vld [vmem:[%s6158_s4 + $0x90] ss:$8 sps:$4 sm:$0xff]  }
 0x2e3   : > { %v4147_v14 = vld [vmem:[%s6158_s4 + $0xa4] ss:$8 sps:$4 sm:$0xff]   ;;  %v4110_v32 = vld [vmem:[%s6158_s4 + $0x134] ss:$8 sps:$4 sm:$0xff]  }
 0x2e4   : > { %4522 = vpow2.f32 %v900_v15  ;;  %v4149_v15 = vld [vmem:[%s6158_s4 + $0xa0] ss:$8 sps:$4 sm:$0xff]  }
 0x2e5   : > { %4524 = vpow2.f32 %v902_v16  ;;  %1162 = vmatpush1.bf16.msra.mxu1 %v4125_v35  ;;  %v4153_v16 = vld [vmem:[%s6158_s4 + $0xb4] ss:$8 sps:$4 sm:$0xff]   ;;  %v4108_v35 = vld [vmem:[%s6158_s4 + $0x130] ss:$8 sps:$4 sm:$0xff]  }
 0x2e6   : > { %1163 = vmatprep.subr.bf16.mxu1 %v4129_v2  ;;  %v4116_v2 = vld [vmem:[%s6158_s4 + $0x144] ss:$8 sps:$4 sm:$0xff]  }
 0x2e9   : > { %1164 = vmatpush1.bf16.msra.mxu1 %v4131_v3  ;;  %v4114_v3 = vld [vmem:[%s6158_s4 + $0x140] ss:$8 sps:$4 sm:$0xff]  }
 0x2ea   : > { %1165 = vmatprep.subr.bf16.mxu1 %v4135_v10  ;;  %v4122_v10 = vld [vmem:[%s6158_s4 + $0x154] ss:$8 sps:$4 sm:$0xff]  }
 0x2ed   : > { %1166 = vmatpush1.bf16.msra.mxu1 %v4137_v11  ;;  %v4120_v11 = vld [vmem:[%s6158_s4 + $0x150] ss:$8 sps:$4 sm:$0xff]  }
 0x2ee   : > { %v5002_v17 = vpop.eup %4522  ;;  %1167 = vmatprep.subr.bf16.mxu1 %v4141_v12  ;;  %v4128_v12 = vld [vmem:[%s6158_s4 + $0x164] ss:$8 sps:$4 sm:$0xff]  }
 0x2ef   : > { %v5004_v24 = vpop.eup %4524  ;;  %v904_v25 = vsel %vm892_vm1, %v5002_v17, 0.0 }
 0x2f0   : > { %v905_v28 = vsel %vm892_vm1, %v5004_v24, 0.0 }
 0x2f1   : > { %v906_v31 = vadd.f32 %v905_v28, %v904_v25  ;;  %1168 = vmatpush1.bf16.msra.mxu1 %v4143_v13  ;;  %v4155_v25 = vld [vmem:[%s6158_s4 + $0xb0] ss:$8 sps:$4 sm:$0xff]   ;;  %v4159_v28 = vld [vmem:[%s6158_s4 + $0xc4] ss:$8 sps:$4 sm:$0xff]   ;;  %v4126_v13 = vld [vmem:[%s6158_s4 + $0x160] ss:$8 sps:$4 sm:$0xff]  }
 0x2f2   : > { %1169 = vmatprep.subr.bf16.mxu1 %v4147_v14  ;;  %v4134_v14 = vld [vmem:[%s6158_s4 + $0x174] ss:$8 sps:$4 sm:$0xff]  }
 0x2f3   : > { %907 = vadd.xlane.f32.xlu0 %v906_v31  ;;  %v4161_v31 = vld [vmem:[%s6158_s4 + $0xc0] ss:$8 sps:$4 sm:$0xff]  }
 0x2f5   : > { %1170 = vmatpush1.bf16.msra.mxu1 %v4149_v15  ;;  %v4132_v15 = vld [vmem:[%s6158_s4 + $0x170] ss:$8 sps:$4 sm:$0xff]  }
 0x2f6   : > { %1171 = vmatprep.subr.bf16.mxu1 %v4153_v16  ;;  %v4140_v16 = vld [vmem:[%s6158_s4 + $0x184] ss:$8 sps:$4 sm:$0xff]  }
 0x2f9   : > { %1172 = vmatpush1.bf16.msra.mxu1 %v4155_v25  ;;  %v4138_v25 = vld [vmem:[%s6158_s4 + $0x180] ss:$8 sps:$4 sm:$0xff]  }
 0x2fa   : > { %1173 = vmatprep.subr.bf16.mxu1 %v4159_v28  ;;  %v4146_v28 = vld [vmem:[%s6158_s4 + $0x194] ss:$8 sps:$4 sm:$0xff]  }
 0x2fd   : > { %1174 = vmatpush1.bf16.msra.mxu1 %v4161_v31  ;;  %v4144_v31 = vld [vmem:[%s6158_s4 + $0x190] ss:$8 sps:$4 sm:$0xff]  }
 0x2fe   : > { %1175 = vmatprep.subr.bf16.mxu1 %v4165_v36  ;;  %v4152_v36 = vld [vmem:[%s6158_s4 + $0x1a4] ss:$8 sps:$4 sm:$0xff]  }
 0x301   : > { %1176 = vmatpush1.bf16.msra.mxu1 %v4167_v37  ;;  %v4150_v37 = vld [vmem:[%s6158_s4 + $0x1a0] ss:$8 sps:$4 sm:$0xff]  }
 0x302   : > { %1177 = vmatprep.subr.bf16.mxu1 %v4171_v40  ;;  %v4158_v40 = vld [vmem:[%s6158_s4 + $0x1b4] ss:$8 sps:$4 sm:$0xff]  }
 0x305   : > { %1178 = vmatpush1.bf16.msra.mxu1 %v4173_v41  ;;  %v4156_v41 = vld [vmem:[%s6158_s4 + $0x1b0] ss:$8 sps:$4 sm:$0xff]  }
 0x380   : > { %v908_v48 = vpop.xlane.xlu0 %907 }
 0x381   : > { %4526 = vrcp.f32 %v908_v48  ;;  %v4164_v48 = vld [vmem:[%s6158_s4 + $0x1c4] ss:$8 sps:$4 sm:$0xff]  }
 0x38b   : > { %v4527_v49 = vpop.eup %4526 }
 0x38c   : > { %v911_v50 = vmul.f32 %v4527_v49, %v5004_v24  ;;  %v910_v51 = vmul.f32 %v4527_v49, %v5002_v17  ;;  %v4104_v17 = vld [vmem:[%s6158_s4 + $0x124] ss:$8 sps:$4 sm:$0xff]   ;;  %v4102_v24 = vld [vmem:[%s6158_s4 + $0x120] ss:$8 sps:$4 sm:$0xff]  }
 0x38d   : > { %v4162_v49 = vld [vmem:[%s6158_s4 + $0x1c0] ss:$8 sps:$4 sm:$0xff]  }
 0x38e   : > { %v913_v56 = vpack.c.bf16 %v911_v50, %v911_v50  ;;  %v912_v57 = vpack.c.bf16 %v910_v51, %v910_v51  ;;  %v4170_v50 = vld [vmem:[%s6158_s4 + $0x1d4] ss:$8 sps:$4 sm:$0xff]   ;;  %v4168_v51 = vld [vmem:[%s6158_s4 + $0x1d0] ss:$8 sps:$4 sm:$0xff]  }
 0x390   : > { %946 = vmatprep.mubr.bf16.mxu0 %v913_v56  ;;  %v4176_v56 = vld [vmem:[%s6158_s4 + $0x1e4] ss:$8 sps:$4 sm:$0xff]  }
 0x391   : > { %947 = vmatmul.mubr.bf16.vlgmr.msra.gmra.mrb[68].mxu0 %v912_v57  ;;  %v4174_v57 = vld [vmem:[%s6158_s4 + $0x1e0] ss:$8 sps:$4 sm:$0xff]  }
 0x392   : > { %1392 = vmatpush1.bf16.msra.mxu0 %v4090_v60  ;;  %v4177_v60 = vld [vmem:[%s6158_s4 + $0xf4] ss:$8 sps:$4 sm:$0xff]  }
 0x393   : > { %1393 = vmatprep.subr.bf16.mxu0 %v4098_v61  ;;  %v4179_v61 = vld [vmem:[%s6158_s4 + $0xf0] ss:$8 sps:$4 sm:$0xff]   ;;  %1179 = vmatprep.subr.bf16.mxu1 %v4177_v60  ;;  %v4209_v60 = vld [vmem:[%s6158_s4 + $0x244] ss:$8 sps:$4 sm:$0xff]  }
 0x394   : > { %1180 = vmatpush1.bf16.msra.mxu1 %v4179_v61  ;;  %v4204_v61 = vld [vmem:[%s6158_s4 + $0x330] ss:$8 sps:$4 sm:$0xff]  }
 0x396   : > { %1394 = vmatpush1.bf16.msra.mxu0 %v4096_v30  ;;  %v4182_v30 = vld [vmem:[%s6158_s4 + $0x1f4] ss:$8 sps:$4 sm:$0xff]  }
 0x397   : > { %1395 = vmatprep.subr.bf16.mxu0 %v4104_v17  ;;  %v4180_v17 = vld [vmem:[%s6158_s4 + $0x1f0] ss:$8 sps:$4 sm:$0xff]  }
 0x39a   : > { %1396 = vmatpush1.bf16.msra.mxu0 %v4102_v24  ;;  %v4185_v24 = vld [vmem:[%s6158_s4 + $0x204] ss:$8 sps:$4 sm:$0xff]  }
 0x39b   : > { %1397 = vmatprep.subr.bf16.mxu0 %v4110_v32  ;;  %1631 = vmatprep.subr.bf16.mxu1 %v4185_v24  ;;  %v4188_v32 = vld [vmem:[%s6158_s4 + $0x304] ss:$8 sps:$4 sm:$0xff]   ;;  %v4215_v24 = vld [vmem:[%s6158_s4 + $0x254] ss:$8 sps:$4 sm:$0xff]  }
 0x39e   : > { %1398 = vmatpush1.bf16.msra.mxu0 %v4108_v35 }
 0x39f   : > { %1399 = vmatprep.subr.bf16.mxu0 %v4116_v2 }
 0x3a2   : > { %1400 = vmatpush1.bf16.msra.mxu0 %v4114_v3 }
 0x3a3   : > { %1401 = vmatprep.subr.bf16.mxu0 %v4122_v10 }
 0x3a6   : > { %1402 = vmatpush1.bf16.msra.mxu0 %v4120_v11 }
 0x3a7   : > { %1403 = vmatprep.subr.bf16.mxu0 %v4128_v12  ;;  %v4183_v12 = vld [vmem:[%s6158_s4 + $0x200] ss:$8 sps:$4 sm:$0xff]  }
 0x3aa   : > { %1404 = vmatpush1.bf16.msra.mxu0 %v4126_v13 }
 0x3ab   : > { %1405 = vmatprep.subr.bf16.mxu0 %v4134_v14 }
 0x3ae   : > { %1406 = vmatpush1.bf16.msra.mxu0 %v4132_v15 }
 0x3af   : > { %1407 = vmatprep.subr.bf16.mxu0 %v4140_v16  ;;  %v4186_v16 = vld [vmem:[%s6158_s4 + $0x300] ss:$8 sps:$4 sm:$0xff]  }
 0x3b2   : > { %1408 = vmatpush1.bf16.msra.mxu0 %v4138_v25  ;;  %v4191_v25 = vld [vmem:[%s6158_s4 + $0x214] ss:$8 sps:$4 sm:$0xff]  }
 0x3b3   : > { %1409 = vmatprep.subr.bf16.mxu0 %v4146_v28 }
 0x3b6   : > { %1410 = vmatpush1.bf16.msra.mxu0 %v4144_v31  ;;  %v4194_v31 = vld [vmem:[%s6158_s4 + $0x314] ss:$8 sps:$4 sm:$0xff]  }
 0x3b7   : > { %1411 = vmatprep.subr.bf16.mxu0 %v4152_v36  ;;  %v4189_v36 = vld [vmem:[%s6158_s4 + $0x210] ss:$8 sps:$4 sm:$0xff]  }
 0x3ba   : > { %1412 = vmatpush1.bf16.msra.mxu0 %v4150_v37 }
 0x3bb   : > { %1413 = vmatprep.subr.bf16.mxu0 %v4158_v40  ;;  %v4197_v40 = vld [vmem:[%s6158_s4 + $0x224] ss:$8 sps:$4 sm:$0xff]  }
 0x3be   : > { %1414 = vmatpush1.bf16.msra.mxu0 %v4156_v41  ;;  %v4192_v41 = vld [vmem:[%s6158_s4 + $0x310] ss:$8 sps:$4 sm:$0xff]  }
 0x3bf   : > { %1415 = vmatprep.subr.bf16.mxu0 %v4164_v48  ;;  %v4200_v48 = vld [vmem:[%s6158_s4 + $0x324] ss:$8 sps:$4 sm:$0xff]  }
 0x3c2   : > { %1416 = vmatpush1.bf16.msra.mxu0 %v4162_v49  ;;  %v4195_v49 = vld [vmem:[%s6158_s4 + $0x220] ss:$8 sps:$4 sm:$0xff]  }
 0x3c3   : > { %1417 = vmatprep.subr.bf16.mxu0 %v4170_v50  ;;  %v4203_v50 = vld [vmem:[%s6158_s4 + $0x234] ss:$8 sps:$4 sm:$0xff]  }
 0x3c6   : > { %1418 = vmatpush1.bf16.msra.mxu0 %v4168_v51  ;;  %v4198_v51 = vld [vmem:[%s6158_s4 + $0x320] ss:$8 sps:$4 sm:$0xff]  }
 0x3c7   : > { %1419 = vmatprep.subr.bf16.mxu0 %v4176_v56  ;;  %v4206_v56 = vld [vmem:[%s6158_s4 + $0x334] ss:$8 sps:$4 sm:$0xff]  }
 0x3ca   : > { %1420 = vmatpush1.bf16.msra.mxu0 %v4174_v57  ;;  %v4201_v57 = vld [vmem:[%s6158_s4 + $0x230] ss:$8 sps:$4 sm:$0xff]  }
 0x3cb   : > { %1421 = vmatprep.subr.bf16.mxu0 %v4182_v30  ;;  %v4212_v30 = vld [vmem:[%s6158_s4 + $0x344] ss:$8 sps:$4 sm:$0xff]  }
 0x3ce   : > { %1422 = vmatpush1.bf16.msra.mxu0 %v4180_v17  ;;  %v4207_v17 = vld [vmem:[%s6158_s4 + $0x240] ss:$8 sps:$4 sm:$0xff]  }
 0x3cf   : > { %1869 = vmatprep.subr.bf16.mxu0 %v4188_v32  ;;  %v4210_v32 = vld [vmem:[%s6158_s4 + $0x340] ss:$8 sps:$4 sm:$0xff]  }
 0x464   : > { %v948_v35 = vpop.f32.mrb[68].mxu0 }
 0x465   : > { %v5210_v2 = vpack.c.bf16 %v948_v35, %v948_v35  ;;  %v950_v3 = vpop.f32.mrb[69].mxu0  ;;  %v4218_v35 = vld [vmem:[%s6158_s4 + $0x354] ss:$8 sps:$4 sm:$0xff]  }
 0x466   : > { %v956_v10 = vpack.c.bf16 %v950_v3, %v950_v3  ;;  %v952_v11 = vpop.f32.mrb[70].mxu0  ;;  %v4213_v3 = vld [vmem:[%s6158_s4 + $0x250] ss:$8 sps:$4 sm:$0xff]  }
 0x467   : > { %v953_v13 = vpop.f32.mrb[71].mxu0  ;;  %v1224_v28 = vshrl.u32 %v5210_v2, 16  ;;  %v4216_v11 = vld [vmem:[%s6158_s4 + $0x350] ss:$8 sps:$4 sm:$0xff]  }
 0x468   : > { %1181 = vmatprep.mubr.bf16.mxu1 %v956_v10  ;;  %v1227_v14 = vshrl.u32 %v956_v10, 16  ;;  %v1468_v15 = vrot.slane %v956_v10, 1  ;;  %v4221_v10 = vld [vmem:[%s6158_s4 + $0x264] ss:$8 sps:$4 sm:$0xff]   ;;  %v4219_v13 = vld [vmem:[%s6158_s4 + $0x260] ss:$8 sps:$4 sm:$0xff]  }
 0x469   : > { %1182 = vmatmul.mubr.bf16.vlgmr.msra.gmra.mrb[0].mxu1 %v5210_v2 }
 0x46a   : > { %1632 = vmatpush1.bf16.msra.mxu1 %v4183_v12  ;;  %1423 = vmatprep.mubr.bf16.mxu0 %v1227_v14  ;;  %v1706_v37 = vrot.slane %v1227_v14, 1  ;;  %v4224_v12 = vld [vmem:[%s6158_s4 + $0x364] ss:$8 sps:$4 sm:$0xff]   ;;  %v4227_v14 = vld [vmem:[%s6158_s4 + $0x274] ss:$8 sps:$4 sm:$0xff]  }
 0x46b   : > { %1663 = vmatprep.mubr.bf16.mxu1 %v1468_v15  ;;  %1424 = vmatmul.mubr.bf16.vlgmr.msra.gmra.mrb[72].mxu0 %v1224_v28  ;;  %v4222_v15 = vld [vmem:[%s6158_s4 + $0x360] ss:$8 sps:$4 sm:$0xff]  }
 0x46c   : > { %1870 = vmatpush1.bf16.msra.mxu0 %v4186_v16  ;;  %1633 = vmatprep.subr.bf16.mxu1 %v4191_v25  ;;  %v4230_v16 = vld [vmem:[%s6158_s4 + $0x374] ss:$8 sps:$4 sm:$0xff]   ;;  %v4225_v25 = vld [vmem:[%s6158_s4 + $0x270] ss:$8 sps:$4 sm:$0xff]  }
 0x46d   : > { %1901 = vmatprep.mubr.bf16.mxu0 %v1706_v37  ;;  %1871 = vmatprep.subr.bf16.mxu0 %v4194_v31  ;;  %v4233_v31 = vld [vmem:[%s6158_s4 + $0x284] ss:$8 sps:$4 sm:$0xff]  }
 0x46e   : > { %1634 = vmatpush1.bf16.msra.mxu1 %v4189_v36  ;;  %v4228_v36 = vld [vmem:[%s6158_s4 + $0x370] ss:$8 sps:$4 sm:$0xff]   ;;  %v4236_v37 = vld [vmem:[%s6158_s4 + $0x384] ss:$8 sps:$4 sm:$0xff]  }
 0x46f   : > { %1635 = vmatprep.subr.bf16.mxu1 %v4197_v40  ;;  %v4231_v40 = vld [vmem:[%s6158_s4 + $0x280] ss:$8 sps:$4 sm:$0xff]  }
 0x470   : > { %1872 = vmatpush1.bf16.msra.mxu0 %v4192_v41  ;;  %v4239_v41 = vld [vmem:[%s6158_s4 + $0x294] ss:$8 sps:$4 sm:$0xff]  }
 0x471   : > { %1873 = vmatprep.subr.bf16.mxu0 %v4200_v48  ;;  %v4234_v48 = vld [vmem:[%s6158_s4 + $0x380] ss:$8 sps:$4 sm:$0xff]  }
 0x472   : > { %1636 = vmatpush1.bf16.msra.mxu1 %v4195_v49  ;;  %v4242_v49 = vld [vmem:[%s6158_s4 + $0x394] ss:$8 sps:$4 sm:$0xff]  }
 0x473   : > { %1637 = vmatprep.subr.bf16.mxu1 %v4203_v50  ;;  %v4237_v50 = vld [vmem:[%s6158_s4 + $0x290] ss:$8 sps:$4 sm:$0xff]  }
 0x474   : > { %1874 = vmatpush1.bf16.msra.mxu0 %v4198_v51  ;;  %v4245_v51 = vld [vmem:[%s6158_s4 + $0x2a4] ss:$8 sps:$4 sm:$0xff]  }
 0x475   : > { %1875 = vmatprep.subr.bf16.mxu0 %v4206_v56  ;;  %v4240_v56 = vld [vmem:[%s6158_s4 + $0x390] ss:$8 sps:$4 sm:$0xff]  }
 0x476   : > { %1638 = vmatpush1.bf16.msra.mxu1 %v4201_v57  ;;  %v4248_v57 = vld [vmem:[%s6158_s4 + $0x3a4] ss:$8 sps:$4 sm:$0xff]  }
 0x477   : > { %1639 = vmatprep.subr.bf16.mxu1 %v4209_v60  ;;  %v4243_v60 = vld [vmem:[%s6158_s4 + $0x2a0] ss:$8 sps:$4 sm:$0xff]  }
 0x478   : > { %1876 = vmatpush1.bf16.msra.mxu0 %v4204_v61  ;;  %v4251_v61 = vld [vmem:[%s6158_s4 + $0x2b4] ss:$8 sps:$4 sm:$0xff]  }
 0x479   : > { %1877 = vmatprep.subr.bf16.mxu0 %v4212_v30  ;;  %v4246_v30 = vld [vmem:[%s6158_s4 + $0x3a0] ss:$8 sps:$4 sm:$0xff]  }
 0x47a   : > { %1640 = vmatpush1.bf16.msra.mxu1 %v4207_v17  ;;  %v4254_v17 = vld [vmem:[%s6158_s4 + $0x3b4] ss:$8 sps:$4 sm:$0xff]  }
 0x47b   : > { %1641 = vmatprep.subr.bf16.mxu1 %v4215_v24  ;;  %v4249_v24 = vld [vmem:[%s6158_s4 + $0x2b0] ss:$8 sps:$4 sm:$0xff]  }
 0x47c   : > { %1878 = vmatpush1.bf16.msra.mxu0 %v4210_v32  ;;  %v4257_v32 = vld [vmem:[%s6158_s4 + $0x2c4] ss:$8 sps:$4 sm:$0xff]  }
 0x47d   : > { %1879 = vmatprep.subr.bf16.mxu0 %v4218_v35  ;;  %v4252_v35 = vld [vmem:[%s6158_s4 + $0x3b0] ss:$8 sps:$4 sm:$0xff]  }
 0x47e   : > { %1642 = vmatpush1.bf16.msra.mxu1 %v4213_v3  ;;  %v4260_v3 = vld [vmem:[%s6158_s4 + $0x3c4] ss:$8 sps:$4 sm:$0xff]  }
 0x47f   : > { %1643 = vmatprep.subr.bf16.mxu1 %v4221_v10  ;;  %v4255_v10 = vld [vmem:[%s6158_s4 + $0x2c0] ss:$8 sps:$4 sm:$0xff]  }
 0x480   : > { %1880 = vmatpush1.bf16.msra.mxu0 %v4216_v11  ;;  %v4263_v11 = vld [vmem:[%s6158_s4 + $0x2d4] ss:$8 sps:$4 sm:$0xff]  }
 0x481   : > { %1881 = vmatprep.subr.bf16.mxu0 %v4224_v12  ;;  %v4258_v12 = vld [vmem:[%s6158_s4 + $0x3c0] ss:$8 sps:$4 sm:$0xff]  }
 0x482   : > { %1644 = vmatpush1.bf16.msra.mxu1 %v4219_v13  ;;  %v4266_v13 = vld [vmem:[%s6158_s4 + $0x3d4] ss:$8 sps:$4 sm:$0xff]  }
 0x483   : > { %1645 = vmatprep.subr.bf16.mxu1 %v4227_v14  ;;  %v4261_v14 = vld [vmem:[%s6158_s4 + $0x2d0] ss:$8 sps:$4 sm:$0xff]  }
 0x484   : > { %1882 = vmatpush1.bf16.msra.mxu0 %v4222_v15  ;;  %v4269_v15 = vld [vmem:[%s6158_s4 + $0x2e4] ss:$8 sps:$4 sm:$0xff]  }
 0x485   : > { %1883 = vmatprep.subr.bf16.mxu0 %v4230_v16  ;;  %v4264_v16 = vld [vmem:[%s6158_s4 + $0x3d0] ss:$8 sps:$4 sm:$0xff]  }
 0x486   : > { %1646 = vmatpush1.bf16.msra.mxu1 %v4225_v25  ;;  %v4272_v25 = vld [vmem:[%s6158_s4 + $0x3e4] ss:$8 sps:$4 sm:$0xff]  }
 0x487   : > { %1647 = vmatprep.subr.bf16.mxu1 %v4233_v31  ;;  %v4267_v31 = vld [vmem:[%s6158_s4 + $0x2e0] ss:$8 sps:$4 sm:$0xff]  }
 0x488   : > { %1884 = vmatpush1.bf16.msra.mxu0 %v4228_v36  ;;  %v4275_v36 = vld [vmem:[%s6158_s4 + $0x2f4] ss:$8 sps:$4 sm:$0xff]  }
 0x489   : > { %1885 = vmatprep.subr.bf16.mxu0 %v4236_v37  ;;  %v4270_v37 = vld [vmem:[%s6158_s4 + $0x3e0] ss:$8 sps:$4 sm:$0xff]  }
 0x48a   : > { %1648 = vmatpush1.bf16.msra.mxu1 %v4231_v40  ;;  %v4278_v40 = vld [vmem:[%s6158_s4 + $0x3f4] ss:$8 sps:$4 sm:$0xff]  }
 0x48b   : > { %1649 = vmatprep.subr.bf16.mxu1 %v4239_v41  ;;  %v4273_v41 = vld [vmem:[%s6158_s4 + $0x2f0] ss:$8 sps:$4 sm:$0xff]  }
 0x48c   : > { %1886 = vmatpush1.bf16.msra.mxu0 %v4234_v48  ;;  %v4276_v48 = vld [vmem:[%s6158_s4 + $0x3f0] ss:$8 sps:$4 sm:$0xff]  }
 0x48d   : > { %1887 = vmatprep.subr.bf16.mxu0 %v4242_v49  ;;  %v1467_v49 = vrot.slane %v5210_v2, 1  ;;  %v836_v2 = vld [vmem:[%s6159_s5] sm:$0xff] }
 0x48e   : > { %1650 = vmatpush1.bf16.msra.mxu1 %v4237_v50  ;;  %v1705_v50 = vrot.slane %v1224_v28, 1 }
 0x48f   : > { %1651 = vmatprep.subr.bf16.mxu1 %v4245_v51 }
 0x490   : > { %1888 = vmatpush1.bf16.msra.mxu0 %v4240_v56 }
 0x491   : > { %1889 = vmatprep.subr.bf16.mxu0 %v4248_v57 }
 0x492   : > { %1652 = vmatpush1.bf16.msra.mxu1 %v4243_v60 }
 0x493   : > { %1653 = vmatprep.subr.bf16.mxu1 %v4251_v61 }
 0x494   : > { %1890 = vmatpush1.bf16.msra.mxu0 %v4246_v30 }
 0x495   : > { %1891 = vmatprep.subr.bf16.mxu0 %v4254_v17 }
 0x496   : > { %1654 = vmatpush1.bf16.msra.mxu1 %v4249_v24 }
 0x497   : > { %1655 = vmatprep.subr.bf16.mxu1 %v4257_v32 }
 0x498   : > { %1892 = vmatpush1.bf16.msra.mxu0 %v4252_v35 }
 0x499   : > { %1893 = vmatprep.subr.bf16.mxu0 %v4260_v3 }
 0x49a   : > { %1656 = vmatpush1.bf16.msra.mxu1 %v4255_v10 }
 0x49b   : > { %1657 = vmatprep.subr.bf16.mxu1 %v4263_v11 }
 0x49c   : > { %1894 = vmatpush1.bf16.msra.mxu0 %v4258_v12 }
 0x49d   : > { %1895 = vmatprep.subr.bf16.mxu0 %v4266_v13 }
 0x49e   : > { %1658 = vmatpush1.bf16.msra.mxu1 %v4261_v14 }
 0x49f   : > { %1659 = vmatprep.subr.bf16.mxu1 %v4269_v15 }
 0x4a0   : > { %1896 = vmatpush1.bf16.msra.mxu0 %v4264_v16 }
 0x4a1   : > { %1897 = vmatprep.subr.bf16.mxu0 %v4272_v25 }
 0x4a2   : > { %1660 = vmatpush1.bf16.msra.mxu1 %v4267_v31 }
 0x4a3   : > { %1661 = vmatprep.subr.bf16.mxu1 %v4275_v36 }
 0x4a4   : > { %1898 = vmatpush1.bf16.msra.mxu0 %v4270_v37  ;;  %v1938_v37 = vcombine.high %v836_v2, %v836_v2 }
 0x4a5   : > { %1899 = vmatprep.subr.bf16.mxu0 %v4278_v40 }
 0x4a6   : > { %1662 = vmatpush1.bf16.msra.mxu1 %v4273_v41 }
 0x4a8   : > { %1900 = vmatpush1.bf16.msra.mxu0 %v4276_v48 }
 0x4a9   : > { %1664 = vmatmul.mubr.bf16.vlgmr.msra.gmra.mrb[4].mxu1 %v1467_v49 }
 0x4ab   : > { %1902 = vmatmul.mubr.bf16.vlgmr.msra.gmra.mrb[76].mxu0 %v1705_v50 }
 0x53c   : > { %v1183_v51 = vpop.f32.mrb[0].mxu1 }
 0x53d   : > { %v1185_v56 = vpop.f32.mrb[1].mxu1 }
 0x53e   : > { %v1187_v57 = vpop.f32.mrb[2].mxu1  ;;  %v1425_v60 = vpop.f32.mrb[72].mxu0 }
 0x53f   : > { %v1912_v61 = vrot.slane %v1425_v60, 7  ;;  %v1188_v30 = vpop.f32.mrb[3].mxu1  ;;  %v1427_v17 = vpop.f32.mrb[73].mxu0 }
 0x540   : > { %v1913_v24 = vrot.slane %v1427_v17, 7  ;;  %v1429_v32 = vpop.f32.mrb[74].mxu0  ;;  %v4280_v17 = vld [vmem:[%s6162_s8] ss:$8 sps:$4 sm:$0xff]  }
 0x541   : > { %v1929_v35 = vsel %vm1928_vm2, %v1183_v51, %v1912_v61  ;;  %v1430_v3 = vpop.f32.mrb[75].mxu0  ;;  %v4283_v32 = vld [vmem:[%s6162_s8 + $0x100] ss:$8 sps:$4 sm:$0xff]  }
 0x542   : > { %v1930_v10 = vsel %vm1928_vm2, %v1185_v56, %v1913_v24  ;;  %v4282_v24 = vld [vmem:[%s6162_s8 + $0x4] ss:$8 sps:$4 sm:$0xff]   ;;  %v4288_v3 = vld [vmem:[%s6162_s8 + $0x14] ss:$8 sps:$4 sm:$0xff]  }
 0x543   : > { %2411 = vmatprep.subr.bf16.mxu0 %v4282_v24  ;;  %v4324_v24 = vld [vmem:[%s6162_s8 + $0x74] ss:$8 sps:$4 sm:$0xff]  }
 0x544   : > { %2412 = vmatpush1.bf16.msra.mxu0 %v4280_v17  ;;  %v4319_v17 = vld [vmem:[%s6162_s8 + $0x160] ss:$8 sps:$4 sm:$0xff]  }
 0x545   : > { %2413 = vmatprep.subr.bf16.mxu0 %v4288_v3  ;;  %v4325_v3 = vld [vmem:[%s6162_s8 + $0x170] ss:$8 sps:$4 sm:$0xff]  }
 0x57c   : > { %v1665_v11 = vpop.f32.mrb[4].mxu1 }
 0x57d   : > { %v1918_v28 = vrot.slane %v1665_v11, 6  ;;  %v1667_v12 = vpop.f32.mrb[5].mxu1  ;;  %v4286_v11 = vld [vmem:[%s6162_s8 + $0x10] ss:$8 sps:$4 sm:$0xff]  }
 0x57e   : > { %v1919_v13 = vrot.slane %v1667_v12, 6  ;;  %v1669_v14 = vpop.f32.mrb[6].mxu1  ;;  %v1903_v15 = vpop.f32.mrb[76].mxu0  ;;  %v4297_v12 = vld [vmem:[%s6162_s8 + $0x124] ss:$8 sps:$4 sm:$0xff]   ;;  %2414 = vmatpush1.bf16.msra.mxu0 %v4286_v11 }
 0x57f   : > { %v1932_v16 = vsel %vm1931_vm3, %v1929_v35, %v1918_v28  ;;  %v1924_v25 = vrot.slane %v1903_v15, 5  ;;  %v1670_v31 = vpop.f32.mrb[7].mxu1  ;;  %v1905_v36 = vpop.f32.mrb[77].mxu0  ;;  %v4285_v35 = vld [vmem:[%s6162_s8 + $0x104] ss:$8 sps:$4 sm:$0xff]  }
 0x580   : > { %v1933_v40 = vsel %vm1931_vm3, %v1930_v10, %v1919_v13  ;;  %v1925_v41 = vrot.slane %v1905_v36, 5  ;;  %v1907_v48 = vpop.f32.mrb[78].mxu0  ;;  %v4291_v10 = vld [vmem:[%s6162_s8 + $0x114] ss:$8 sps:$4 sm:$0xff]   ;;  %2210 = vmatprep.subr.bf16.mxu1 %v4285_v35  ;;  %v4294_v28 = vld [vmem:[%s6162_s8 + $0x24] ss:$8 sps:$4 sm:$0xff]  }
 0x581   : > { %v1908_v49 = vpop.f32.mrb[79].mxu0  ;;  %v1935_v50 = vsel %vm1934_vm4, %v1932_v16, %v1924_v25  ;;  %2211 = vmatpush1.bf16.msra.mxu1 %v4283_v32  ;;  %v4292_v13 = vld [vmem:[%s6162_s8 + $0x20] ss:$8 sps:$4 sm:$0xff]   ;;  %2415 = vmatprep.subr.bf16.mxu0 %v4294_v28  ;;  %v4300_v15 = vld [vmem:[%s6162_s8 + $0x34] ss:$8 sps:$4 sm:$0xff]  }
 0x582   : > { %v1936_v51 = vsel %vm1934_vm4, %v1933_v40, %v1925_v41  ;;  %v5408_v56 = vadd.f32 %v1935_v50, %v836_v2  ;;  %v4289_v2 = vld [vmem:[%s6162_s8 + $0x110] ss:$8 sps:$4 sm:$0xff]   ;;  %2212 = vmatprep.subr.bf16.mxu1 %v4291_v10  ;;  %v4295_v14 = vld [vmem:[%s6162_s8 + $0x120] ss:$8 sps:$4 sm:$0xff]   ;;  %v4303_v16 = vld [vmem:[%s6162_s8 + $0x134] ss:$8 sps:$4 sm:$0xff]   ;;  %2416 = vmatpush1.bf16.msra.mxu0 %v4292_v13 }
 0x583   : > { %v5410_v57 = vadd.f32 %v1938_v37, %v1936_v51  ;;  %v4298_v25 = vld [vmem:[%s6162_s8 + $0x30] ss:$8 sps:$4 sm:$0xff]   ;;  %2417 = vmatprep.subr.bf16.mxu0 %v4300_v15  ;;  %v4306_v36 = vld [vmem:[%s6162_s8 + $0x44] ss:$8 sps:$4 sm:$0xff]   ;;  %v4304_v40 = vld [vmem:[%s6162_s8 + $0x40] ss:$8 sps:$4 sm:$0xff]  }
 0x584   : > { %v1942_v60 = vsel %vm892_vm1, %v5408_v56, 0.0  ;;  %v4301_v31 = vld [vmem:[%s6162_s8 + $0x130] ss:$8 sps:$4 sm:$0xff]   ;;  %v4309_v37 = vld [vmem:[%s6162_s8 + $0x144] ss:$8 sps:$4 sm:$0xff]  }
 0x585   : > { %v1943_v61 = vsel %vm892_vm1, %v5410_v57, 0.0  ;;  %2213 = vmatpush1.bf16.msra.mxu1 %v4289_v2  ;;  %v4307_v41 = vld [vmem:[%s6162_s8 + $0x140] ss:$8 sps:$4 sm:$0xff]   ;;  %v4312_v48 = vld [vmem:[%s6162_s8 + $0x54] ss:$8 sps:$4 sm:$0xff]  }
 0x586   : > { %v1944_v30 = vadd.f32 %v1943_v61, %v1942_v60  ;;  %2214 = vmatprep.subr.bf16.mxu1 %v4297_v12  ;;  %2418 = vmatpush1.bf16.msra.mxu0 %v4298_v25  ;;  %v4315_v49 = vld [vmem:[%s6162_s8 + $0x154] ss:$8 sps:$4 sm:$0xff]   ;;  %v4310_v50 = vld [vmem:[%s6162_s8 + $0x50] ss:$8 sps:$4 sm:$0xff]   ;;  %v4318_v60 = vld [vmem:[%s6162_s8 + $0x64] ss:$8 sps:$4 sm:$0xff]  }
 0x587   : > { %2419 = vmatprep.subr.bf16.mxu0 %v4306_v36  ;;  %v4313_v51 = vld [vmem:[%s6162_s8 + $0x150] ss:$8 sps:$4 sm:$0xff]   ;;  %v4321_v61 = vld [vmem:[%s6162_s8 + $0x164] ss:$8 sps:$4 sm:$0xff]   ;;  %v4327_v32 = vld [vmem:[%s6162_s8 + $0x174] ss:$8 sps:$4 sm:$0xff]  }
 0x588   : > { %1945 = vadd.xlane.f32.xlu1 %v1944_v30  ;;  %v4316_v30 = vld [vmem:[%s6162_s8 + $0x60] ss:$8 sps:$4 sm:$0xff]   ;;  %v4322_v35 = vld [vmem:[%s6162_s8 + $0x70] ss:$8 sps:$4 sm:$0xff]   ;;  %v4330_v10 = vld [vmem:[%s6162_s8 + $0x84] ss:$8 sps:$4 sm:$0xff]  }
 0x589   : > { %2215 = vmatpush1.bf16.msra.mxu1 %v4295_v14  ;;  %v4333_v11 = vld [vmem:[%s6162_s8 + $0x184] ss:$8 sps:$4 sm:$0xff]   ;;  %v4328_v2 = vld [vmem:[%s6162_s8 + $0x80] ss:$8 sps:$4 sm:$0xff]   ;;  %v4336_v12 = vld [vmem:[%s6162_s8 + $0x94] ss:$8 sps:$4 sm:$0xff]  }
 0x58a   : > { %2216 = vmatprep.subr.bf16.mxu1 %v4303_v16  ;;  %2420 = vmatpush1.bf16.msra.mxu0 %v4304_v40  ;;  %v4331_v28 = vld [vmem:[%s6162_s8 + $0x180] ss:$8 sps:$4 sm:$0xff]   ;;  %v4339_v13 = vld [vmem:[%s6162_s8 + $0x194] ss:$8 sps:$4 sm:$0xff]   ;;  %v4334_v14 = vld [vmem:[%s6162_s8 + $0x90] ss:$8 sps:$4 sm:$0xff]  }
 0x58b   : > { %2421 = vmatprep.subr.bf16.mxu0 %v4312_v48  ;;  %v4337_v15 = vld [vmem:[%s6162_s8 + $0x190] ss:$8 sps:$4 sm:$0xff]  }
 0x58d   : > { %2217 = vmatpush1.bf16.msra.mxu1 %v4301_v31 }
 0x58e   : > { %2218 = vmatprep.subr.bf16.mxu1 %v4309_v37  ;;  %2422 = vmatpush1.bf16.msra.mxu0 %v4310_v50  ;;  %v4345_v50 = vld [vmem:[%s6162_s8 + $0x1a4] ss:$8 sps:$4 sm:$0xff]  }
 0x58f   : > { %2423 = vmatprep.subr.bf16.mxu0 %v4318_v60  ;;  %v4348_v60 = vld [vmem:[%s6162_s8 + $0xb4] ss:$8 sps:$4 sm:$0xff]  }
 0x591   : > { %2219 = vmatpush1.bf16.msra.mxu1 %v4307_v41 }
 0x592   : > { %2220 = vmatprep.subr.bf16.mxu1 %v4315_v49  ;;  %2424 = vmatpush1.bf16.msra.mxu0 %v4316_v30  ;;  %v4351_v30 = vld [vmem:[%s6162_s8 + $0x1b4] ss:$8 sps:$4 sm:$0xff]  }
 0x593   : > { %2425 = vmatprep.subr.bf16.mxu0 %v4324_v24  ;;  %v4354_v24 = vld [vmem:[%s6162_s8 + $0xc4] ss:$8 sps:$4 sm:$0xff]  }
 0x595   : > { %2221 = vmatpush1.bf16.msra.mxu1 %v4313_v51  ;;  %v4343_v51 = vld [vmem:[%s6162_s8 + $0x1a0] ss:$8 sps:$4 sm:$0xff]  }
 0x596   : > { %2222 = vmatprep.subr.bf16.mxu1 %v4321_v61  ;;  %2426 = vmatpush1.bf16.msra.mxu0 %v4322_v35  ;;  %v4346_v61 = vld [vmem:[%s6162_s8 + $0xb0] ss:$8 sps:$4 sm:$0xff]   ;;  %v4357_v35 = vld [vmem:[%s6162_s8 + $0x1c4] ss:$8 sps:$4 sm:$0xff]  }
 0x597   : > { %2427 = vmatprep.subr.bf16.mxu0 %v4330_v10  ;;  %v4360_v10 = vld [vmem:[%s6162_s8 + $0xd4] ss:$8 sps:$4 sm:$0xff]  }
 0x599   : > { %2223 = vmatpush1.bf16.msra.mxu1 %v4319_v17  ;;  %v4349_v17 = vld [vmem:[%s6162_s8 + $0x1b0] ss:$8 sps:$4 sm:$0xff]  }
 0x59a   : > { %2224 = vmatprep.subr.bf16.mxu1 %v4327_v32  ;;  %2428 = vmatpush1.bf16.msra.mxu0 %v4328_v2  ;;  %v4352_v32 = vld [vmem:[%s6162_s8 + $0xc0] ss:$8 sps:$4 sm:$0xff]   ;;  %v4363_v2 = vld [vmem:[%s6162_s8 + $0x1d4] ss:$8 sps:$4 sm:$0xff]  }
 0x59b   : > { %2429 = vmatprep.subr.bf16.mxu0 %v4336_v12  ;;  %v4364_v12 = vld [vmem:[%s6162_s8 + $0xe0] ss:$8 sps:$4 sm:$0xff]  }
 0x59d   : > { %2225 = vmatpush1.bf16.msra.mxu1 %v4325_v3  ;;  %v4355_v3 = vld [vmem:[%s6162_s8 + $0x1c0] ss:$8 sps:$4 sm:$0xff]  }
 0x59e   : > { %2226 = vmatprep.subr.bf16.mxu1 %v4333_v11  ;;  %2430 = vmatpush1.bf16.msra.mxu0 %v4334_v14  ;;  %v4358_v11 = vld [vmem:[%s6162_s8 + $0xd0] ss:$8 sps:$4 sm:$0xff]   ;;  %v4367_v14 = vld [vmem:[%s6162_s8 + $0x1e0] ss:$8 sps:$4 sm:$0xff]  }
 0x5a1   : > { %2227 = vmatpush1.bf16.msra.mxu1 %v4331_v28  ;;  %v4361_v28 = vld [vmem:[%s6162_s8 + $0x1d0] ss:$8 sps:$4 sm:$0xff]  }
 0x5a2   : > { %2228 = vmatprep.subr.bf16.mxu1 %v4339_v13  ;;  %v4366_v13 = vld [vmem:[%s6162_s8 + $0xe4] ss:$8 sps:$4 sm:$0xff]  }
 0x5a5   : > { %2229 = vmatpush1.bf16.msra.mxu1 %v4337_v15  ;;  %v4369_v15 = vld [vmem:[%s6162_s8 + $0x1e4] ss:$8 sps:$4 sm:$0xff]  }
 0x5a6   : > { %2230 = vmatprep.subr.bf16.mxu1 %v4345_v50  ;;  %v837_v50 = vld [vmem:[%s6160_s6] sm:$0xff] }
 0x5a9   : > { %2231 = vmatpush1.bf16.msra.mxu1 %v4343_v51  ;;  %v838_v51 = vld [vmem:[%s6161_s7] sm:$0xff] }
 0x5aa   : > { %2232 = vmatprep.subr.bf16.mxu1 %v4351_v30 }
 0x5ad   : > { %2233 = vmatpush1.bf16.msra.mxu1 %v4349_v17 }
 0x5ae   : > { %2234 = vmatprep.subr.bf16.mxu1 %v4357_v35 }
 0x5b1   : > { %2235 = vmatpush1.bf16.msra.mxu1 %v4355_v3 }
 0x5b2   : > { %2236 = vmatprep.subr.bf16.mxu1 %v4363_v2 }
 0x5b5   : > { %2237 = vmatpush1.bf16.msra.mxu1 %v4361_v28 }
 0x5b6   : > { %2238 = vmatprep.subr.bf16.mxu1 %v4369_v15 }
 0x5b9   : > { %2239 = vmatpush1.bf16.msra.mxu1 %v4367_v14  ;;  %v4381_v14 = vld [vmem:[%s6162_s8 + $0x200] ss:$8 sps:$4 sm:$0xff]  }
 0x615   : > { %v1946_v16 = vpop.xlane.xlu1 %1945 }
 0x616   : > { %v1948_v25 = vmul.f32 0.00390625, %v1946_v16  ;;  %v4372_v16 = vld [vmem:[%s6162_s8 + $0xf4] ss:$8 sps:$4 sm:$0xff]  }
 0x618   : > { %v5537_v31 = vsub.f32 %v5408_v56, %v1948_v25  ;;  %v5540_v36 = vsub.f32 %v5410_v57, %v1948_v25  ;;  %v4342_v56 = vld [vmem:[%s6162_s8 + $0xa4] ss:$8 sps:$4 sm:$0xff]   ;;  %v4340_v57 = vld [vmem:[%s6162_s8 + $0xa0] ss:$8 sps:$4 sm:$0xff]   ;;  %v4375_v25 = vld [vmem:[%s6162_s8 + $0x1f4] ss:$8 sps:$4 sm:$0xff]  }
 0x619   : > { %2431 = vmatprep.subr.bf16.mxu0 %v4342_v56  ;;  %2240 = vmatprep.subr.bf16.mxu1 %v4375_v25 }
 0x61a   : > { %v1951_v37 = vmul.f32 %v5537_v31, %v5537_v31  ;;  %v1952_v40 = vmul.f32 %v5540_v36, %v5540_v36  ;;  %2432 = vmatpush1.bf16.msra.mxu0 %v4340_v57 }
 0x61b   : > { %2433 = vmatprep.subr.bf16.mxu0 %v4348_v60  ;;  %v1964_v60 = vcombine.high %v837_v50, %v837_v50 }
 0x61c   : > { %v1953_v41 = vsel %vm892_vm1, %v1951_v37, 0.0  ;;  %v1954_v48 = vsel %vm892_vm1, %v1952_v40, 0.0  ;;  %v4370_v37 = vld [vmem:[%s6162_s8 + $0xf0] ss:$8 sps:$4 sm:$0xff]  }
 0x61d   : > { %v1955_v49 = vadd.f32 %v1954_v48, %v1953_v41  ;;  %v4373_v40 = vld [vmem:[%s6162_s8 + $0x1f0] ss:$8 sps:$4 sm:$0xff]   ;;  %v4380_v41 = vld [vmem:[%s6162_s8 + $0x304] ss:$8 sps:$4 sm:$0xff]  }
 0x61e   : > { %2434 = vmatpush1.bf16.msra.mxu0 %v4346_v61  ;;  %2241 = vmatpush1.bf16.msra.mxu1 %v4373_v40  ;;  %v4383_v48 = vld [vmem:[%s6162_s8 + $0x204] ss:$8 sps:$4 sm:$0xff]  }
 0x61f   : > { %1956 = vadd.xlane.f32.xlu1 %v1955_v49  ;;  %2435 = vmatprep.subr.bf16.mxu0 %v4354_v24  ;;  %v1969_v24 = vcombine.high %v838_v51, %v838_v51 }
 0x620   : > { %2651 = vmatprep.subr.bf16.mxu1 %v4383_v48  ;;  %v4387_v48 = vld [vmem:[%s6162_s8 + $0x210] ss:$8 sps:$4 sm:$0xff]  }
 0x622   : > { %2436 = vmatpush1.bf16.msra.mxu0 %v4352_v32 }
 0x623   : > { %2437 = vmatprep.subr.bf16.mxu0 %v4360_v10 }
 0x626   : > { %2438 = vmatpush1.bf16.msra.mxu0 %v4358_v11 }
 0x627   : > { %2439 = vmatprep.subr.bf16.mxu0 %v4366_v13 }
 0x62a   : > { %2440 = vmatpush1.bf16.msra.mxu0 %v4364_v12  ;;  %v4378_v12 = vld [vmem:[%s6162_s8 + $0x300] ss:$8 sps:$4 sm:$0xff]  }
 0x62b   : > { %2441 = vmatprep.subr.bf16.mxu0 %v4372_v16  ;;  %v4389_v16 = vld [vmem:[%s6162_s8 + $0x214] ss:$8 sps:$4 sm:$0xff]  }
 0x62e   : > { %2442 = vmatpush1.bf16.msra.mxu0 %v4370_v37  ;;  %v4384_v37 = vld [vmem:[%s6162_s8 + $0x310] ss:$8 sps:$4 sm:$0xff]  }
 0x62f   : > { %2891 = vmatprep.subr.bf16.mxu0 %v4380_v41  ;;  %v4392_v41 = vld [vmem:[%s6162_s8 + $0x324] ss:$8 sps:$4 sm:$0xff]  }
 0x6ac   : > { %v1957_v49 = vpop.xlane.xlu1 %1956 }
 0x6ad   : > { %v1958_v56 = vmul.f32 0.00390625, %v1957_v49  ;;  %v4395_v49 = vld [vmem:[%s6162_s8 + $0x224] ss:$8 sps:$4 sm:$0xff]  }
 0x6af   : > { %v1959_v57 = vadd.f32 1e-05, %v1958_v56  ;;  %v4390_v56 = vld [vmem:[%s6162_s8 + $0x320] ss:$8 sps:$4 sm:$0xff]  }
 0x6b1   : > { %4528 = vrsqrt.f32 %v1959_v57  ;;  %v4398_v57 = vld [vmem:[%s6162_s8 + $0x334] ss:$8 sps:$4 sm:$0xff]  }
 0x6bb   : > { %v4529_v61 = vpop.eup %4528 }
 0x6bc   : > { %v1961_v30 = vmul.f32 %v4529_v61, %v5537_v31  ;;  %v1962_v17 = vmul.f32 %v4529_v61, %v5540_v36  ;;  %v4386_v31 = vld [vmem:[%s6162_s8 + $0x314] ss:$8 sps:$4 sm:$0xff]   ;;  %v4404_v61 = vld [vmem:[%s6162_s8 + $0x344] ss:$8 sps:$4 sm:$0xff]  }
 0x6be   : > { %v1967_v32 = vmul.f32 %v1964_v60, %v1962_v17  ;;  %v1966_v35 = vmul.f32 %v1961_v30, %v837_v50  ;;  %v4393_v50 = vld [vmem:[%s6162_s8 + $0x220] ss:$8 sps:$4 sm:$0xff]   ;;  %v4396_v60 = vld [vmem:[%s6162_s8 + $0x330] ss:$8 sps:$4 sm:$0xff]   ;;  %v4407_v17 = vld [vmem:[%s6162_s8 + $0x244] ss:$8 sps:$4 sm:$0xff]  }
 0x6bf   : > { %v4399_v30 = vld [vmem:[%s6162_s8 + $0x230] ss:$8 sps:$4 sm:$0xff]  }
 0x6c0   : > { %v1972_v3 = vadd.f32 %v1969_v24, %v1967_v32  ;;  %v1971_v10 = vadd.f32 %v1966_v35, %v838_v51  ;;  %v4401_v51 = vld [vmem:[%s6162_s8 + $0x234] ss:$8 sps:$4 sm:$0xff]   ;;  %v4402_v24 = vld [vmem:[%s6162_s8 + $0x340] ss:$8 sps:$4 sm:$0xff]  }
 0x6c1   : > { %v4410_v32 = vld [vmem:[%s6162_s8 + $0x354] ss:$8 sps:$4 sm:$0xff]   ;;  %v4405_v35 = vld [vmem:[%s6162_s8 + $0x240] ss:$8 sps:$4 sm:$0xff]  }
 0x6c2   : > { %v1974_v11 = vmax.f32 %v1972_v3, 0.0  ;;  %v1973_v2 = vmax.f32 %v1971_v10, 0.0  ;;  %v4413_v3 = vld [vmem:[%s6162_s8 + $0x254] ss:$8 sps:$4 sm:$0xff]   ;;  %v4408_v10 = vld [vmem:[%s6162_s8 + $0x350] ss:$8 sps:$4 sm:$0xff]  }
 0x6c4   : > { %v1976_v28 = vpack.c.bf16 %v1974_v11, %v1974_v11  ;;  %v5637_v13 = vpack.c.bf16 %v1973_v2, %v1973_v2  ;;  %v4416_v11 = vld [vmem:[%s6162_s8 + $0x364] ss:$8 sps:$4 sm:$0xff]   ;;  %v4411_v2 = vld [vmem:[%s6162_s8 + $0x250] ss:$8 sps:$4 sm:$0xff]  }
 0x6c6   : > { %2443 = vmatprep.mubr.bf16.mxu0 %v1976_v28  ;;  %v2046_v36 = vshrl.u32 %v1976_v28, 16  ;;  %v2043_v15 = vshrl.u32 %v5637_v13, 16  ;;  %v2488_v25 = vrot.slane %v1976_v28, 1  ;;  %v4419_v28 = vld [vmem:[%s6162_s8 + $0x264] ss:$8 sps:$4 sm:$0xff]  }
 0x6c7   : > { %2444 = vmatmul.mubr.bf16.vlgmr.msra.gmra.mrb[80].mxu0 %v5637_v13 }
 0x6c8   : > { %2892 = vmatpush1.bf16.msra.mxu0 %v4378_v12  ;;  %2242 = vmatprep.mubr.bf16.mxu1 %v2046_v36  ;;  %v2728_v40 = vrot.slane %v2046_v36, 1  ;;  %v4414_v12 = vld [vmem:[%s6162_s8 + $0x360] ss:$8 sps:$4 sm:$0xff]  }
 0x6c9   : > { %2243 = vmatmul.mubr.bf16.vlgmr.msra.gmra.mrb[8].mxu1 %v2043_v15  ;;  %2893 = vmatprep.subr.bf16.mxu0 %v4386_v31  ;;  %v4422_v31 = vld [vmem:[%s6162_s8 + $0x374] ss:$8 sps:$4 sm:$0xff]   ;;  %v4417_v36 = vld [vmem:[%s6162_s8 + $0x260] ss:$8 sps:$4 sm:$0xff]  }
 0x6ca   : > { %2652 = vmatpush1.bf16.msra.mxu1 %v4381_v14  ;;  %2683 = vmatprep.mubr.bf16.mxu1 %v2488_v25  ;;  %v4425_v14 = vld [vmem:[%s6162_s8 + $0x274] ss:$8 sps:$4 sm:$0xff]   ;;  %v4428_v25 = vld [vmem:[%s6162_s8 + $0x384] ss:$8 sps:$4 sm:$0xff]  }
 0x6cb   : > { %2923 = vmatprep.mubr.bf16.mxu0 %v2728_v40  ;;  %2653 = vmatprep.subr.bf16.mxu1 %v4389_v16  ;;  %v4420_v16 = vld [vmem:[%s6162_s8 + $0x370] ss:$8 sps:$4 sm:$0xff]   ;;  %v4431_v40 = vld [vmem:[%s6162_s8 + $0x284] ss:$8 sps:$4 sm:$0xff]  }
 0x6cc   : > { %2894 = vmatpush1.bf16.msra.mxu0 %v4384_v37  ;;  %v4423_v37 = vld [vmem:[%s6162_s8 + $0x270] ss:$8 sps:$4 sm:$0xff]  }
 0x6cd   : > { %2895 = vmatprep.subr.bf16.mxu0 %v4392_v41  ;;  %v4426_v41 = vld [vmem:[%s6162_s8 + $0x380] ss:$8 sps:$4 sm:$0xff]  }
 0x6ce   : > { %2654 = vmatpush1.bf16.msra.mxu1 %v4387_v48  ;;  %v4434_v48 = vld [vmem:[%s6162_s8 + $0x394] ss:$8 sps:$4 sm:$0xff]  }
 0x6cf   : > { %2655 = vmatprep.subr.bf16.mxu1 %v4395_v49  ;;  %v4429_v49 = vld [vmem:[%s6162_s8 + $0x280] ss:$8 sps:$4 sm:$0xff]  }
 0x6d0   : > { %2896 = vmatpush1.bf16.msra.mxu0 %v4390_v56  ;;  %v4437_v56 = vld [vmem:[%s6162_s8 + $0x294] ss:$8 sps:$4 sm:$0xff]  }
 0x6d1   : > { %2897 = vmatprep.subr.bf16.mxu0 %v4398_v57  ;;  %v4432_v57 = vld [vmem:[%s6162_s8 + $0x390] ss:$8 sps:$4 sm:$0xff]  }
 0x6d2   : > { %2656 = vmatpush1.bf16.msra.mxu1 %v4393_v50  ;;  %v4440_v50 = vld [vmem:[%s6162_s8 + $0x3a4] ss:$8 sps:$4 sm:$0xff]  }
 0x6d3   : > { %2657 = vmatprep.subr.bf16.mxu1 %v4401_v51  ;;  %v4435_v51 = vld [vmem:[%s6162_s8 + $0x290] ss:$8 sps:$4 sm:$0xff]  }
 0x6d4   : > { %2898 = vmatpush1.bf16.msra.mxu0 %v4396_v60  ;;  %v4443_v60 = vld [vmem:[%s6162_s8 + $0x2a4] ss:$8 sps:$4 sm:$0xff]  }
 0x6d5   : > { %2899 = vmatprep.subr.bf16.mxu0 %v4404_v61  ;;  %v4438_v61 = vld [vmem:[%s6162_s8 + $0x3a0] ss:$8 sps:$4 sm:$0xff]  }
 0x6d6   : > { %2658 = vmatpush1.bf16.msra.mxu1 %v4399_v30  ;;  %v4446_v30 = vld [vmem:[%s6162_s8 + $0x3b4] ss:$8 sps:$4 sm:$0xff]  }
 0x6d7   : > { %2659 = vmatprep.subr.bf16.mxu1 %v4407_v17  ;;  %v4441_v17 = vld [vmem:[%s6162_s8 + $0x2a0] ss:$8 sps:$4 sm:$0xff]  }
 0x6d8   : > { %2900 = vmatpush1.bf16.msra.mxu0 %v4402_v24  ;;  %v4449_v24 = vld [vmem:[%s6162_s8 + $0x2b4] ss:$8 sps:$4 sm:$0xff]  }
 0x6d9   : > { %2901 = vmatprep.subr.bf16.mxu0 %v4410_v32  ;;  %v4444_v32 = vld [vmem:[%s6162_s8 + $0x3b0] ss:$8 sps:$4 sm:$0xff]  }
 0x6da   : > { %2660 = vmatpush1.bf16.msra.mxu1 %v4405_v35  ;;  %v4452_v35 = vld [vmem:[%s6162_s8 + $0x3c4] ss:$8 sps:$4 sm:$0xff]  }
 0x6db   : > { %2661 = vmatprep.subr.bf16.mxu1 %v4413_v3  ;;  %v4447_v3 = vld [vmem:[%s6162_s8 + $0x2b0] ss:$8 sps:$4 sm:$0xff]  }
 0x6dc   : > { %2902 = vmatpush1.bf16.msra.mxu0 %v4408_v10  ;;  %v4455_v10 = vld [vmem:[%s6162_s8 + $0x2c4] ss:$8 sps:$4 sm:$0xff]  }
 0x6dd   : > { %2903 = vmatprep.subr.bf16.mxu0 %v4416_v11  ;;  %v4450_v11 = vld [vmem:[%s6162_s8 + $0x3c0] ss:$8 sps:$4 sm:$0xff]  }
 0x6de   : > { %2662 = vmatpush1.bf16.msra.mxu1 %v4411_v2  ;;  %v4458_v2 = vld [vmem:[%s6162_s8 + $0x3d4] ss:$8 sps:$4 sm:$0xff]  }
 0x6df   : > { %2663 = vmatprep.subr.bf16.mxu1 %v4419_v28  ;;  %v4453_v28 = vld [vmem:[%s6162_s8 + $0x2c0] ss:$8 sps:$4 sm:$0xff]  }
 0x6e0   : > { %2904 = vmatpush1.bf16.msra.mxu0 %v4414_v12  ;;  %v4461_v12 = vld [vmem:[%s6162_s8 + $0x2d4] ss:$8 sps:$4 sm:$0xff]  }
 0x6e1   : > { %2905 = vmatprep.subr.bf16.mxu0 %v4422_v31  ;;  %v4456_v31 = vld [vmem:[%s6162_s8 + $0x3d0] ss:$8 sps:$4 sm:$0xff]  }
 0x6e2   : > { %2664 = vmatpush1.bf16.msra.mxu1 %v4417_v36  ;;  %v4464_v36 = vld [vmem:[%s6162_s8 + $0x3e4] ss:$8 sps:$4 sm:$0xff]  }
 0x6e3   : > { %2665 = vmatprep.subr.bf16.mxu1 %v4425_v14  ;;  %v4459_v14 = vld [vmem:[%s6162_s8 + $0x2d0] ss:$8 sps:$4 sm:$0xff]  }
 0x6e4   : > { %2906 = vmatpush1.bf16.msra.mxu0 %v4420_v16  ;;  %v4467_v16 = vld [vmem:[%s6162_s8 + $0x2e4] ss:$8 sps:$4 sm:$0xff]  }
 0x6e5   : > { %2907 = vmatprep.subr.bf16.mxu0 %v4428_v25  ;;  %v4462_v25 = vld [vmem:[%s6162_s8 + $0x3e0] ss:$8 sps:$4 sm:$0xff]  }
 0x6e6   : > { %2666 = vmatpush1.bf16.msra.mxu1 %v4423_v37  ;;  %v4470_v37 = vld [vmem:[%s6162_s8 + $0x3f4] ss:$8 sps:$4 sm:$0xff]  }
 0x6e7   : > { %2667 = vmatprep.subr.bf16.mxu1 %v4431_v40  ;;  %v4465_v40 = vld [vmem:[%s6162_s8 + $0x2e0] ss:$8 sps:$4 sm:$0xff]  }
 0x6e8   : > { %2908 = vmatpush1.bf16.msra.mxu0 %v4426_v41  ;;  %v4473_v41 = vld [vmem:[%s6162_s8 + $0x2f4] ss:$8 sps:$4 sm:$0xff]  }
 0x6e9   : > { %2909 = vmatprep.subr.bf16.mxu0 %v4434_v48  ;;  %v4468_v48 = vld [vmem:[%s6162_s8 + $0x3f0] ss:$8 sps:$4 sm:$0xff]  }
 0x6ea   : > { %2668 = vmatpush1.bf16.msra.mxu1 %v4429_v49  ;;  %v4471_v49 = vld [vmem:[%s6162_s8 + $0x2f0] ss:$8 sps:$4 sm:$0xff]  }
 0x6eb   : > { %2669 = vmatprep.subr.bf16.mxu1 %v4437_v56  ;;  %v4476_v56 = vld [vmem:[%s6163_s9 + $0x4] ss:$8 sps:$4 sm:$0xff]  }
 0x6ec   : > { %2910 = vmatpush1.bf16.msra.mxu0 %v4432_v57  ;;  %v2727_v57 = vrot.slane %v2043_v15, 1  ;;  %v4477_v15 = vld [vmem:[%s6163_s9 + $0x10] ss:$8 sps:$4 sm:$0xff]  }
 0x6ed   : > { %2911 = vmatprep.subr.bf16.mxu0 %v4440_v50  ;;  %v4474_v50 = vld [vmem:[%s6163_s9] ss:$8 sps:$4 sm:$0xff]  }
 0x6ee   : > { %2670 = vmatpush1.bf16.msra.mxu1 %v4435_v51  ;;  %v2487_v51 = vrot.slane %v5637_v13, 1  ;;  %v4480_v13 = vld [vmem:[%s6163_s9 + $0x20] ss:$8 sps:$4 sm:$0xff]  }
 0x6ef   : > { %2671 = vmatprep.subr.bf16.mxu1 %v4443_v60  ;;  %v4479_v60 = vld [vmem:[%s6163_s9 + $0x14] ss:$8 sps:$4 sm:$0xff]  }
 0x6f0   : > { %2912 = vmatpush1.bf16.msra.mxu0 %v4438_v61  ;;  %v4482_v61 = vld [vmem:[%s6163_s9 + $0x24] ss:$8 sps:$4 sm:$0xff]  }
 0x6f1   : > { %2913 = vmatprep.subr.bf16.mxu0 %v4446_v30  ;;  %v4485_v30 = vld [vmem:[%s6163_s9 + $0x34] ss:$8 sps:$4 sm:$0xff]  }
 0x6f2   : > { %2672 = vmatpush1.bf16.msra.mxu1 %v4441_v17  ;;  %v4488_v17 = vld [vmem:[%s6163_s9 + $0x44] ss:$8 sps:$4 sm:$0xff]  }
 0x6f3   : > { %2673 = vmatprep.subr.bf16.mxu1 %v4449_v24  ;;  %v4486_v24 = vld [vmem:[%s6163_s9 + $0x40] ss:$8 sps:$4 sm:$0xff]  }
 0x6f4   : > { %2914 = vmatpush1.bf16.msra.mxu0 %v4444_v32  ;;  %v4491_v32 = vld [vmem:[%s6163_s9 + $0x54] ss:$8 sps:$4 sm:$0xff]  }
 0x6f5   : > { %2915 = vmatprep.subr.bf16.mxu0 %v4452_v35  ;;  %v4489_v35 = vld [vmem:[%s6163_s9 + $0x50] ss:$8 sps:$4 sm:$0xff]  }
 0x6f6   : > { %2674 = vmatpush1.bf16.msra.mxu1 %v4447_v3  ;;  %v4494_v3 = vld [vmem:[%s6163_s9 + $0x64] ss:$8 sps:$4 sm:$0xff]  }
 0x6f7   : > { %2675 = vmatprep.subr.bf16.mxu1 %v4455_v10  ;;  %v4492_v10 = vld [vmem:[%s6163_s9 + $0x60] ss:$8 sps:$4 sm:$0xff]  }
 0x6f8   : > { %2916 = vmatpush1.bf16.msra.mxu0 %v4450_v11  ;;  %v4497_v11 = vld [vmem:[%s6163_s9 + $0x74] ss:$8 sps:$4 sm:$0xff]  }
 0x6f9   : > { %2917 = vmatprep.subr.bf16.mxu0 %v4458_v2  ;;  %v4495_v2 = vld [vmem:[%s6163_s9 + $0x70] ss:$8 sps:$4 sm:$0xff]  }
 0x6fa   : > { %2676 = vmatpush1.bf16.msra.mxu1 %v4453_v28  ;;  %v4500_v28 = vld [vmem:[%s6163_s9 + $0x84] ss:$8 sps:$4 sm:$0xff]  }
 0x6fb   : > { %2677 = vmatprep.subr.bf16.mxu1 %v4461_v12  ;;  %v4498_v12 = vld [vmem:[%s6163_s9 + $0x80] ss:$8 sps:$4 sm:$0xff]  }
 0x6fc   : > { %2918 = vmatpush1.bf16.msra.mxu0 %v4456_v31  ;;  %v4503_v31 = vld [vmem:[%s6163_s9 + $0x94] ss:$8 sps:$4 sm:$0xff]  }
 0x6fd   : > { %2919 = vmatprep.subr.bf16.mxu0 %v4464_v36  ;;  %v4501_v36 = vld [vmem:[%s6163_s9 + $0x90] ss:$8 sps:$4 sm:$0xff]  }
 0x6fe   : > { %2678 = vmatpush1.bf16.msra.mxu1 %v4459_v14  ;;  %v4506_v14 = vld [vmem:[%s6163_s9 + $0xa4] ss:$8 sps:$4 sm:$0xff]  }
 0x6ff   : > { %2679 = vmatprep.subr.bf16.mxu1 %v4467_v16  ;;  %v4504_v16 = vld [vmem:[%s6163_s9 + $0xa0] ss:$8 sps:$4 sm:$0xff]  }
 0x700   : > { %2920 = vmatpush1.bf16.msra.mxu0 %v4462_v25  ;;  %v4509_v25 = vld [vmem:[%s6163_s9 + $0xb4] ss:$8 sps:$4 sm:$0xff]  }
 0x701   : > { %2921 = vmatprep.subr.bf16.mxu0 %v4470_v37  ;;  %v4507_v37 = vld [vmem:[%s6163_s9 + $0xb0] ss:$8 sps:$4 sm:$0xff]  }
 0x702   : > { %2680 = vmatpush1.bf16.msra.mxu1 %v4465_v40  ;;  %v4512_v40 = vld [vmem:[%s6163_s9 + $0xc4] ss:$8 sps:$4 sm:$0xff]  }
 0x703   : > { %2681 = vmatprep.subr.bf16.mxu1 %v4473_v41  ;;  %v4510_v41 = vld [vmem:[%s6163_s9 + $0xc0] ss:$8 sps:$4 sm:$0xff]  }
 0x704   : > { %2922 = vmatpush1.bf16.msra.mxu0 %v4468_v48  ;;  %v4515_v48 = vld [vmem:[%s6163_s9 + $0xd4] ss:$8 sps:$4 sm:$0xff]  }
 0x706   : > { %2682 = vmatpush1.bf16.msra.mxu1 %v4471_v49  ;;  %v4513_v49 = vld [vmem:[%s6163_s9 + $0xd0] ss:$8 sps:$4 sm:$0xff]  }
 0x707   : > { %2924 = vmatmul.mubr.bf16.vlgmr.msra.gmra.mrb[84].mxu0 %v2727_v57  ;;  %3147 = vmatprep.subr.bf16.mxu1 %v4476_v56  ;;  %v4518_v56 = vld [vmem:[%s6163_s9 + $0xe4] ss:$8 sps:$4 sm:$0xff]   ;;  %v4516_v57 = vld [vmem:[%s6163_s9 + $0xe0] ss:$8 sps:$4 sm:$0xff]  }
 0x709   : > { %2684 = vmatmul.mubr.bf16.vlgmr.msra.gmra.mrb[12].mxu1 %v2487_v51  ;;  %v4519_v51 = vld [vmem:[%s6163_s9 + $0xf0] ss:$8 sps:$4 sm:$0xff]  }
 0x70a   : > { %3148 = vmatpush1.bf16.msra.mxu1 %v4474_v50  ;;  %3179 = vmatprep.mubr.bf16.mxu1 %v4813_v43  ;;  %v4483_v43 = vld [vmem:[%s6163_s9 + $0x30] ss:$8 sps:$4 sm:$0xff]   ;;  %v4521_v50 = vld [vmem:[%s6163_s9 + $0xf4] ss:$8 sps:$4 sm:$0xff]  }
 0x70b   : > { %3149 = vmatprep.subr.bf16.mxu1 %v4479_v60 }
 0x70e   : > { %3150 = vmatpush1.bf16.msra.mxu1 %v4477_v15 }
 0x70f   : > { %3151 = vmatprep.subr.bf16.mxu1 %v4482_v61 }
 0x712   : > { %3152 = vmatpush1.bf16.msra.mxu1 %v4480_v13 }
 0x713   : > { %3153 = vmatprep.subr.bf16.mxu1 %v4485_v30 }
 0x716   : > { %3154 = vmatpush1.bf16.msra.mxu1 %v4483_v43 }
 0x717   : > { %3155 = vmatprep.subr.bf16.mxu1 %v4488_v17 }
 0x71a   : > { %3156 = vmatpush1.bf16.msra.mxu1 %v4486_v24 }
 0x71b   : > { %3157 = vmatprep.subr.bf16.mxu1 %v4491_v32 }
 0x71e   : > { %3158 = vmatpush1.bf16.msra.mxu1 %v4489_v35 }
 0x71f   : > { %3159 = vmatprep.subr.bf16.mxu1 %v4494_v3 }
 0x722   : > { %3160 = vmatpush1.bf16.msra.mxu1 %v4492_v10 }
 0x723   : > { %3161 = vmatprep.subr.bf16.mxu1 %v4497_v11 }
 0x726   : > { %3162 = vmatpush1.bf16.msra.mxu1 %v4495_v2 }
 0x727   : > { %3163 = vmatprep.subr.bf16.mxu1 %v4500_v28 }
 0x72a   : > { %3164 = vmatpush1.bf16.msra.mxu1 %v4498_v12 }
 0x72b   : > { %3165 = vmatprep.subr.bf16.mxu1 %v4503_v31 }
 0x72e   : > { %3166 = vmatpush1.bf16.msra.mxu1 %v4501_v36 }
 0x72f   : > { %3167 = vmatprep.subr.bf16.mxu1 %v4506_v14 }
 0x732   : > { %3168 = vmatpush1.bf16.msra.mxu1 %v4504_v16 }
 0x733   : > { %3169 = vmatprep.subr.bf16.mxu1 %v4509_v25 }
 0x736   : > { %3170 = vmatpush1.bf16.msra.mxu1 %v4507_v37 }
 0x737   : > { %3171 = vmatprep.subr.bf16.mxu1 %v4512_v40 }
 0x73a   : > { %3172 = vmatpush1.bf16.msra.mxu1 %v4510_v41 }
 0x73b   : > { %3173 = vmatprep.subr.bf16.mxu1 %v4515_v48 }
 0x73e   : > { %3174 = vmatpush1.bf16.msra.mxu1 %v4513_v49 }
 0x73f   : > { %3175 = vmatprep.subr.bf16.mxu1 %v4518_v56 }
 0x742   : > { %3176 = vmatpush1.bf16.msra.mxu1 %v4516_v57 }
 0x743   : > { %3177 = vmatprep.subr.bf16.mxu1 %v4521_v50 }
 0x746   : > { %3178 = vmatpush1.bf16.msra.mxu1 %v4519_v51 }
 0x749   : > { %3180 = vmatmul.mubr.bf16.vlgmr.msra.gmra.mrb[16].mxu1 %v4811_v42 }
 0x74a   : > { %3189 = vmatprep.mubr.bf16.mxu1 %v4823_v53 }
 0x751   : > { %3190 = vmatmul.mubr.bf16.gmra.mrb[20].mxu1 %v4821_v52 }
 0x752   : > { %3199 = vmatprep.mubr.bf16.mxu1 %v4833_v63 }
 0x759   : > { %3200 = vmatmul.mubr.bf16.gmra.mrb[24].mxu1 %v4831_v62 }
 0x75a   : > { %3209 = vmatprep.mubr.bf16.mxu1 %v4843_v9 }
 0x761   : > { %3210 = vmatmul.mubr.bf16.gmra.mrb[28].mxu1 %v4841_v8 }
 0x762   : > { %3219 = vmatprep.mubr.bf16.mxu1 %v4853_v19 }
 0x769   : > { %3220 = vmatmul.mubr.bf16.gmra.mrb[32].mxu1 %v4851_v18 }
 0x76a   : > { %3229 = vmatprep.mubr.bf16.mxu1 %v4863_v34 }
 0x771   : > { %3230 = vmatmul.mubr.bf16.gmra.mrb[36].mxu1 %v4861_v33 }
 0x772   : > { %3239 = vmatprep.mubr.bf16.mxu1 %v4873_v47 }
 0x779   : > { %3240 = vmatmul.mubr.bf16.gmra.mrb[40].mxu1 %v4871_v46 }
 0x77a   : > { %3249 = vmatprep.mubr.bf16.mxu1 %v4883_v59 }
 0x781   : > { %3250 = vmatmul.mubr.bf16.gmra.mrb[44].mxu1 %v4881_v58 }
 0x782   : > { %3259 = vmatprep.mubr.bf16.mxu1 %v4893_v7 }
 0x789   : > { %3260 = vmatmul.mubr.bf16.gmra.mrb[48].mxu1 %v4891_v6 }
 0x78a   : > { %3269 = vmatprep.mubr.bf16.mxu1 %v4903_v21 }
 0x791   : > { %3270 = vmatmul.mubr.bf16.gmra.mrb[52].mxu1 %v4901_v20 }
 0x792   : > { %3279 = vmatprep.mubr.bf16.mxu1 %v4913_v39 }
 0x799   : > { %3280 = vmatmul.mubr.bf16.gmra.mrb[56].mxu1 %v4911_v38 }
 0x79a   : > { %3289 = vmatprep.mubr.bf16.mxu1 %v4923_v55  ;;  %v2445_v42 = vpop.f32.mrb[80].mxu0  ;;  %v839_v55 = vld [vmem:[%s6164_s10] sm:$0x3] }
 0x79b   : > { %v2447_v52 = vpop.f32.mrb[81].mxu0 }
 0x79c   : > { %v2244_v53 = vpop.f32.mrb[8].mxu1  ;;  %v2449_v62 = vpop.f32.mrb[82].mxu0 }
 0x79d   : > { %v2446_v63 = vadd.f32 %v2445_v42, %v2244_v53  ;;  %v2246_v8 = vpop.f32.mrb[9].mxu1  ;;  %v2450_v9 = vpop.f32.mrb[83].mxu0 }
 0x79e   : > { %v2448_v18 = vadd.f32 %v2447_v52, %v2246_v8  ;;  %v2248_v19 = vpop.f32.mrb[10].mxu1 }
 0x79f   : > { %v2249_v33 = vpop.f32.mrb[11].mxu1 }
 0x7a1   : > { %3290 = vmatmul.mubr.bf16.gmra.mrb[60].mxu1 %v4921_v54 }
 0x7a2   : > { %3299 = vmatprep.mubr.bf16.mxu1 %v4933_v5  ;;  %v2942_v5 = vrot.slane %v839_v55, %v437_v29 }
 0x7a9   : > { %3300 = vmatmul.mubr.bf16.gmra.mrb[64].mxu1 %v4931_v4  ;;  %v2938_v4 = vrot.slane %v839_v55, %v4787_v27 }
 0x7aa   : > { %3309 = vmatprep.mubr.bf16.mxu1 %v4943_v23 }
 0x7b1   : > { %3310 = vmatmul.mubr.bf16.gmra.mrb[68].mxu1 %v4941_v22 }
 0x7b2   : > { %3319 = vmatprep.mubr.bf16.mxu1 %v4953_v45 }
 0x7b9   : > { %3320 = vmatmul.mubr.bf16.gmra.mrb[72].mxu1 %v4951_v44 }
 0x7ba   : > { %3329 = vmatprep.mubr.bf16.mxu1 %v4963_v1 }
 0x7c1   : > { %3330 = vmatmul.mubr.bf16.gmra.mrb[76].mxu1 %v4961_v0 }
 0x7da   : > { %v2925_v34 = vpop.f32.mrb[84].mxu0 }
 0x7db   : > { %v2927_v46 = vpop.f32.mrb[85].mxu0 }
 0x7dc   : > { %v2685_v47 = vpop.f32.mrb[12].mxu1  ;;  %v2929_v58 = vpop.f32.mrb[86].mxu0 }
 0x7dd   : > { %v2692_v59 = vadd.f32 %v2685_v47, %v2446_v63  ;;  %v2687_v6 = vpop.f32.mrb[13].mxu1  ;;  %v2930_v7 = vpop.f32.mrb[87].mxu0 }
 0x7de   : > { %v2693_v20 = vadd.f32 %v2687_v6, %v2448_v18  ;;  %v2689_v21 = vpop.f32.mrb[14].mxu1 }
 0x7df   : > { %v2932_v38 = vadd.f32 %v2925_v34, %v2692_v59  ;;  %v2690_v39 = vpop.f32.mrb[15].mxu1 }
 0x7e0   : > { %v2933_v54 = vadd.f32 %v2927_v46, %v2693_v20 }
 0x7e1   : > { %v2945_v22 = vadd.f32 %v2938_v4, %v2932_v38 }
 0x7e2   : > { %v2946_v23 = vadd.f32 %v2942_v5, %v2933_v54 }
 0x7e3   : > { %v5967_v44 = vrot.slane %v2945_v22, %v4787_v27 }
 0x7e4   : > { %v5970_v45 = vrot.slane %v2946_v23, %v4787_v27 }
 0x81c   : > { %v3181_v0 = vpop.f32.mrb[16].mxu1 }
 0x81d   : > { %v3182_v1 = vadd.f32 %v3181_v0, %v5967_v44  ;;  %v3183_v60 = vpop.f32.mrb[17].mxu1 }
 0x81e   : > { %v3184_v15 = vadd.f32 %v3183_v60, %v5970_v45  ;;  %v3185_v61 = vpop.f32.mrb[18].mxu1 }
 0x81f   : > { %3340 = vst [vmem:[%s5974_s22] sm:$0xff] %v3182_v1  ;;  %v3186_v26 = vadd.f32 %v3185_v61, %v5967_v44  ;;  %v3187_v27 = vpop.f32.mrb[19].mxu1 }
 0x820   : > { %3341 = vst [vmem:[%s5974_s22 + $0x8] sm:$0xff] %v3184_v15  ;;  %v3188_v29 = vadd.f32 %v3187_v27, %v5970_v45 }
 0x821   : > { %3342 = vst [vmem:[%s5974_s22 + $0x10] sm:$0xff] %v3186_v26 }
 0x822   : > { %3343 = vst [vmem:[%s5974_s22 + $0x18] sm:$0xff] %v3188_v29 }
 0x824   : > { %v3191_v13 = vpop.f32.mrb[20].mxu1 }
 0x825   : > { %v3192_v30 = vadd.f32 %v3191_v13, %v5967_v44  ;;  %v3193_v43 = vpop.f32.mrb[21].mxu1 }
 0x826   : > { %v3194_v17 = vadd.f32 %v3193_v43, %v5970_v45  ;;  %v3195_v24 = vpop.f32.mrb[22].mxu1 }
 0x827   : > { %3344 = vst [vmem:[%s5974_s22 + $0x20] sm:$0xff] %v3192_v30  ;;  %v3196_v32 = vadd.f32 %v3195_v24, %v5967_v44  ;;  %v3197_v35 = vpop.f32.mrb[23].mxu1 }
 0x828   : > { %3345 = vst [vmem:[%s5974_s22 + $0x28] sm:$0xff] %v3194_v17  ;;  %v3198_v3 = vadd.f32 %v3197_v35, %v5970_v45 }
 0x829   : > { %3346 = vst [vmem:[%s5974_s22 + $0x30] sm:$0xff] %v3196_v32 }
 0x82a   : > { %3347 = vst [vmem:[%s5974_s22 + $0x38] sm:$0xff] %v3198_v3 }
 0x82c   : > { %v3201_v10 = vpop.f32.mrb[24].mxu1 }
 0x82d   : > { %v3202_v11 = vadd.f32 %v3201_v10, %v5967_v44  ;;  %v3203_v2 = vpop.f32.mrb[25].mxu1 }
 0x82e   : > { %v3204_v28 = vadd.f32 %v3203_v2, %v5970_v45  ;;  %v3205_v12 = vpop.f32.mrb[26].mxu1 }
 0x82f   : > { %3348 = vst [vmem:[%s5974_s22 + $0x40] sm:$0xff] %v3202_v11  ;;  %v3206_v31 = vadd.f32 %v3205_v12, %v5967_v44  ;;  %v3207_v36 = vpop.f32.mrb[27].mxu1 }
 0x830   : > { %3349 = vst [vmem:[%s5974_s22 + $0x48] sm:$0xff] %v3204_v28  ;;  %v3208_v14 = vadd.f32 %v3207_v36, %v5970_v45 }
 0x831   : > { %3350 = vst [vmem:[%s5974_s22 + $0x50] sm:$0xff] %v3206_v31 }
 0x832   : > { %3351 = vst [vmem:[%s5974_s22 + $0x58] sm:$0xff] %v3208_v14 }
 0x834   : > { %v3211_v16 = vpop.f32.mrb[28].mxu1 }
 0x835   : > { %v3212_v25 = vadd.f32 %v3211_v16, %v5967_v44  ;;  %v3213_v37 = vpop.f32.mrb[29].mxu1 }
 0x836   : > { %v3214_v40 = vadd.f32 %v3213_v37, %v5970_v45  ;;  %v3215_v41 = vpop.f32.mrb[30].mxu1 }
 0x837   : > { %3352 = vst [vmem:[%s5974_s22 + $0x60] sm:$0xff] %v3212_v25  ;;  %v3216_v48 = vadd.f32 %v3215_v41, %v5967_v44  ;;  %v3217_v49 = vpop.f32.mrb[31].mxu1 }
 0x838   : > { %3353 = vst [vmem:[%s5974_s22 + $0x68] sm:$0xff] %v3214_v40  ;;  %v3218_v56 = vadd.f32 %v3217_v49, %v5970_v45 }
 0x839   : > { %3354 = vst [vmem:[%s5974_s22 + $0x70] sm:$0xff] %v3216_v48 }
 0x83a   : > { %3355 = vst [vmem:[%s5974_s22 + $0x78] sm:$0xff] %v3218_v56 }
 0x83c   : > { %v3221_v57 = vpop.f32.mrb[32].mxu1 }
 0x83d   : > { %v3222_v50 = vadd.f32 %v3221_v57, %v5967_v44  ;;  %v3223_v51 = vpop.f32.mrb[33].mxu1 }
 0x83e   : > { %v3224_v42 = vadd.f32 %v3223_v51, %v5970_v45  ;;  %v3225_v52 = vpop.f32.mrb[34].mxu1 }
 0x83f   : > { %3356 = vst [vmem:[%s5974_s22 + $0x80] sm:$0xff] %v3222_v50  ;;  %v3226_v53 = vadd.f32 %v3225_v52, %v5967_v44  ;;  %v3227_v62 = vpop.f32.mrb[35].mxu1 }
 0x840   : > { %3357 = vst [vmem:[%s5974_s22 + $0x88] sm:$0xff] %v3224_v42  ;;  %v3228_v63 = vadd.f32 %v3227_v62, %v5970_v45 }
 0x841   : > { %3358 = vst [vmem:[%s5974_s22 + $0x90] sm:$0xff] %v3226_v53 }
 0x842   : > { %3359 = vst [vmem:[%s5974_s22 + $0x98] sm:$0xff] %v3228_v63 }
 0x844   : > { %v3231_v8 = vpop.f32.mrb[36].mxu1 }
 0x845   : > { %v3232_v9 = vadd.f32 %v3231_v8, %v5967_v44  ;;  %v3233_v18 = vpop.f32.mrb[37].mxu1 }
 0x846   : > { %v3234_v19 = vadd.f32 %v3233_v18, %v5970_v45  ;;  %v3235_v33 = vpop.f32.mrb[38].mxu1 }
 0x847   : > { %3360 = vst [vmem:[%s5974_s22 + $0xa0] sm:$0xff] %v3232_v9  ;;  %v3236_v34 = vadd.f32 %v3235_v33, %v5967_v44  ;;  %v3237_v46 = vpop.f32.mrb[39].mxu1 }
 0x848   : > { %3361 = vst [vmem:[%s5974_s22 + $0xa8] sm:$0xff] %v3234_v19  ;;  %v3238_v47 = vadd.f32 %v3237_v46, %v5970_v45 }
 0x849   : > { %3362 = vst [vmem:[%s5974_s22 + $0xb0] sm:$0xff] %v3236_v34 }
 0x84a   : > { %3363 = vst [vmem:[%s5974_s22 + $0xb8] sm:$0xff] %v3238_v47 }
 0x84c   : > { %v3241_v58 = vpop.f32.mrb[40].mxu1 }
 0x84d   : > { %v3242_v59 = vadd.f32 %v3241_v58, %v5967_v44  ;;  %v3243_v6 = vpop.f32.mrb[41].mxu1 }
 0x84e   : > { %v3244_v7 = vadd.f32 %v3243_v6, %v5970_v45  ;;  %v3245_v20 = vpop.f32.mrb[42].mxu1 }
 0x84f   : > { %3364 = vst [vmem:[%s5974_s22 + $0xc0] sm:$0xff] %v3242_v59  ;;  %v3246_v21 = vadd.f32 %v3245_v20, %v5967_v44  ;;  %v3247_v38 = vpop.f32.mrb[43].mxu1 }
 0x850   : > { %3365 = vst [vmem:[%s5974_s22 + $0xc8] sm:$0xff] %v3244_v7  ;;  %v3248_v39 = vadd.f32 %v3247_v38, %v5970_v45 }
 0x851   : > { %3366 = vst [vmem:[%s5974_s22 + $0xd0] sm:$0xff] %v3246_v21 }
 0x852   : > { %3367 = vst [vmem:[%s5974_s22 + $0xd8] sm:$0xff] %v3248_v39 }
 0x854   : > { %v3251_v54 = vpop.f32.mrb[44].mxu1 }
 0x855   : > { %v3252_v55 = vadd.f32 %v3251_v54, %v5967_v44  ;;  %v3253_v4 = vpop.f32.mrb[45].mxu1 }
 0x856   : > { %v3254_v5 = vadd.f32 %v3253_v4, %v5970_v45  ;;  %v3255_v22 = vpop.f32.mrb[46].mxu1 }
 0x857   : > { %3368 = vst [vmem:[%s5974_s22 + $0xe0] sm:$0xff] %v3252_v55  ;;  %v3256_v23 = vadd.f32 %v3255_v22, %v5967_v44  ;;  %v3257_v0 = vpop.f32.mrb[47].mxu1 }
 0x858   : > { %3369 = vst [vmem:[%s5974_s22 + $0xe8] sm:$0xff] %v3254_v5  ;;  %v3258_v1 = vadd.f32 %v3257_v0, %v5970_v45 }
 0x859   : > { %3370 = vst [vmem:[%s5974_s22 + $0xf0] sm:$0xff] %v3256_v23 }
 0x85a   : > { %3371 = vst [vmem:[%s5974_s22 + $0xf8] sm:$0xff] %v3258_v1 }
 0x85c   : > { %v3261_v60 = vpop.f32.mrb[48].mxu1 }
 0x85d   : > { %v3262_v15 = vadd.f32 %v3261_v60, %v5967_v44  ;;  %v3263_v61 = vpop.f32.mrb[49].mxu1 }
 0x85e   : > { %v3264_v26 = vadd.f32 %v3263_v61, %v5970_v45  ;;  %v3265_v27 = vpop.f32.mrb[50].mxu1 }
 0x85f   : > { %3372 = vst [vmem:[%s5974_s22 + $0x100] sm:$0xff] %v3262_v15  ;;  %v3266_v29 = vadd.f32 %v3265_v27, %v5967_v44  ;;  %v3267_v13 = vpop.f32.mrb[51].mxu1 }
 0x860   : > { %3373 = vst [vmem:[%s5974_s22 + $0x108] sm:$0xff] %v3264_v26  ;;  %v3268_v30 = vadd.f32 %v3267_v13, %v5970_v45 }
 0x861   : > { %3374 = vst [vmem:[%s5974_s22 + $0x110] sm:$0xff] %v3266_v29 }
 0x862   : > { %3375 = vst [vmem:[%s5974_s22 + $0x118] sm:$0xff] %v3268_v30 }
 0x864   : > { %v3271_v43 = vpop.f32.mrb[52].mxu1 }
 0x865   : > { %v3272_v17 = vadd.f32 %v3271_v43, %v5967_v44  ;;  %v3273_v24 = vpop.f32.mrb[53].mxu1 }
 0x866   : > { %v3274_v32 = vadd.f32 %v3273_v24, %v5970_v45  ;;  %v3275_v35 = vpop.f32.mrb[54].mxu1 }
 0x867   : > { %3376 = vst [vmem:[%s5974_s22 + $0x120] sm:$0xff] %v3272_v17  ;;  %v3276_v3 = vadd.f32 %v3275_v35, %v5967_v44  ;;  %v3277_v10 = vpop.f32.mrb[55].mxu1 }
 0x868   : > { %3377 = vst [vmem:[%s5974_s22 + $0x128] sm:$0xff] %v3274_v32  ;;  %v3278_v11 = vadd.f32 %v3277_v10, %v5970_v45 }
 0x869   : > { %3378 = vst [vmem:[%s5974_s22 + $0x130] sm:$0xff] %v3276_v3 }
 0x86a   : > { %3379 = vst [vmem:[%s5974_s22 + $0x138] sm:$0xff] %v3278_v11 }
 0x86c   : > { %v3281_v2 = vpop.f32.mrb[56].mxu1 }
 0x86d   : > { %v3282_v28 = vadd.f32 %v3281_v2, %v5967_v44  ;;  %v3283_v12 = vpop.f32.mrb[57].mxu1 }
 0x86e   : > { %v3284_v31 = vadd.f32 %v3283_v12, %v5970_v45  ;;  %v3285_v36 = vpop.f32.mrb[58].mxu1 }
 0x86f   : > { %3380 = vst [vmem:[%s5974_s22 + $0x140] sm:$0xff] %v3282_v28  ;;  %v3286_v14 = vadd.f32 %v3285_v36, %v5967_v44  ;;  %v3287_v16 = vpop.f32.mrb[59].mxu1 }
 0x870   : > { %3381 = vst [vmem:[%s5974_s22 + $0x148] sm:$0xff] %v3284_v31  ;;  %v3288_v25 = vadd.f32 %v3287_v16, %v5970_v45 }
 0x871   : > { %3382 = vst [vmem:[%s5974_s22 + $0x150] sm:$0xff] %v3286_v14 }
 0x872   : > { %3383 = vst [vmem:[%s5974_s22 + $0x158] sm:$0xff] %v3288_v25 }
 0x874   : > { %v3291_v37 = vpop.f32.mrb[60].mxu1 }
 0x875   : > { %v3292_v40 = vadd.f32 %v3291_v37, %v5967_v44  ;;  %v3293_v41 = vpop.f32.mrb[61].mxu1 }
 0x876   : > { %v3294_v48 = vadd.f32 %v3293_v41, %v5970_v45  ;;  %v3295_v49 = vpop.f32.mrb[62].mxu1 }
 0x877   : > { %3384 = vst [vmem:[%s5974_s22 + $0x160] sm:$0xff] %v3292_v40  ;;  %v3296_v56 = vadd.f32 %v3295_v49, %v5967_v44  ;;  %v3297_v57 = vpop.f32.mrb[63].mxu1 }
 0x878   : > { %3385 = vst [vmem:[%s5974_s22 + $0x168] sm:$0xff] %v3294_v48  ;;  %v3298_v50 = vadd.f32 %v3297_v57, %v5970_v45 }
 0x879   : > { %3386 = vst [vmem:[%s5974_s22 + $0x170] sm:$0xff] %v3296_v56 }
 0x87a   : > { %3387 = vst [vmem:[%s5974_s22 + $0x178] sm:$0xff] %v3298_v50 }
 0x87c   : > { %v3301_v51 = vpop.f32.mrb[64].mxu1 }
 0x87d   : > { %v3302_v42 = vadd.f32 %v3301_v51, %v5967_v44  ;;  %v3303_v52 = vpop.f32.mrb[65].mxu1 }
 0x87e   : > { %v3304_v53 = vadd.f32 %v3303_v52, %v5970_v45  ;;  %v3305_v62 = vpop.f32.mrb[66].mxu1 }
 0x87f   : > { %3388 = vst [vmem:[%s5974_s22 + $0x180] sm:$0xff] %v3302_v42  ;;  %v3306_v63 = vadd.f32 %v3305_v62, %v5967_v44  ;;  %v3307_v8 = vpop.f32.mrb[67].mxu1 }
 0x880   : > { %3389 = vst [vmem:[%s5974_s22 + $0x188] sm:$0xff] %v3304_v53  ;;  %v3308_v9 = vadd.f32 %v3307_v8, %v5970_v45 }
 0x881   : > { %3390 = vst [vmem:[%s5974_s22 + $0x190] sm:$0xff] %v3306_v63 }
 0x882   : > { %3391 = vst [vmem:[%s5974_s22 + $0x198] sm:$0xff] %v3308_v9 }
 0x884   : > { %v3311_v18 = vpop.f32.mrb[68].mxu1 }
 0x885   : > { %v3312_v19 = vadd.f32 %v3311_v18, %v5967_v44  ;;  %v3313_v33 = vpop.f32.mrb[69].mxu1 }
 0x886   : > { %v3314_v34 = vadd.f32 %v3313_v33, %v5970_v45  ;;  %v3315_v46 = vpop.f32.mrb[70].mxu1 }
 0x887   : > { %3392 = vst [vmem:[%s5974_s22 + $0x1a0] sm:$0xff] %v3312_v19  ;;  %v3316_v47 = vadd.f32 %v3315_v46, %v5967_v44  ;;  %v3317_v58 = vpop.f32.mrb[71].mxu1 }
 0x888   : > { %3393 = vst [vmem:[%s5974_s22 + $0x1a8] sm:$0xff] %v3314_v34  ;;  %v3318_v59 = vadd.f32 %v3317_v58, %v5970_v45 }
 0x889   : > { %3394 = vst [vmem:[%s5974_s22 + $0x1b0] sm:$0xff] %v3316_v47 }
 0x88a   : > { %3395 = vst [vmem:[%s5974_s22 + $0x1b8] sm:$0xff] %v3318_v59 }
 0x88c   : > { %v3321_v6 = vpop.f32.mrb[72].mxu1 }
 0x88d   : > { %v3322_v7 = vadd.f32 %v3321_v6, %v5967_v44  ;;  %v3323_v20 = vpop.f32.mrb[73].mxu1 }
 0x88e   : > { %v3324_v21 = vadd.f32 %v3323_v20, %v5970_v45  ;;  %v3325_v38 = vpop.f32.mrb[74].mxu1 }
 0x88f   : > { %3396 = vst [vmem:[%s5974_s22 + $0x1c0] sm:$0xff] %v3322_v7  ;;  %v3326_v39 = vadd.f32 %v3325_v38, %v5967_v44  ;;  %v3327_v54 = vpop.f32.mrb[75].mxu1 }
 0x890   : > { %3397 = vst [vmem:[%s5974_s22 + $0x1c8] sm:$0xff] %v3324_v21  ;;  %v3328_v55 = vadd.f32 %v3327_v54, %v5970_v45 }
 0x891   : > { %3398 = vst [vmem:[%s5974_s22 + $0x1d0] sm:$0xff] %v3326_v39 }
 0x892   : > { %3399 = vst [vmem:[%s5974_s22 + $0x1d8] sm:$0xff] %v3328_v55 }
 0x894   : > { %v3331_v4 = vpop.f32.mrb[76].mxu1 }
 0x895   : > { %v3332_v5 = vadd.f32 %v3331_v4, %v5967_v44  ;;  %v3333_v22 = vpop.f32.mrb[77].mxu1 }
 0x896   : > { %v3334_v23 = vadd.f32 %v3333_v22, %v5970_v45  ;;  %v3335_v0 = vpop.f32.mrb[78].mxu1 }
 0x897   : > { %3400 = vst [vmem:[%s5974_s22 + $0x1e0] sm:$0xff] %v3332_v5  ;;  %v3336_v1 = vadd.f32 %v3335_v0, %v5967_v44  ;;  %v3337_v60 = vpop.f32.mrb[79].mxu1 }
 0x898   : > { %3401 = vst [vmem:[%s5974_s22 + $0x1e8] sm:$0xff] %v3334_v23  ;;  %v3338_v15 = vadd.f32 %v3337_v60, %v5970_v45 }
 0x899   : > { %3402 = vst [vmem:[%s5974_s22 + $0x1f0] sm:$0xff] %v3336_v1 }
 0x89a   : > { %3403 = vst [vmem:[%s5974_s22 + $0x1f8] sm:$0xff] %v3338_v15 }
 0x89b   : > { %4543 = shalt.err (!%p4540_p3)
}
 0x89c   : > { %s4544_s15 = scalar_lea.hbm %s6103_s30, 8192  ;;  %s4548_s25 = scalar_lea.hbm %s6165_s11, 16384 }
 0x89d   : > { %p4545_p4 = scmp.ne.s32.totalorder %s6103_s30, %s4544_s15  ;;  %p4549_p9 = scmp.lt.u32.totalorder %s6103_s30, %s6165_s11 }
 0x89e   : > { %p4550_p10 = scmp.lt.u32.totalorder %s4548_s25, %s4544_s15  ;;  %p4552_p12 = scmp.lt.u32.totalorder %s4544_s15, %s6103_s30 }
 0x89f   : > { %p4546_p7 = pnand %p4545_p4, %p4696_p5 }
 0x8a0   : > { %p4551_p11 = por %p4550_p10, %p4549_p9 }
 0x8a1   : > { %p4547_p8 = pneg %p4546_p7 }
 0x8a2   : > { %p4553_p13 = por %p4552_p12, %p4551_p11 }
 0x8a4   : > { %p4554_p0 = pnand %p4553_p13, %p4547_p8 }
 0x8a6   : > { %4557 = shalt.err (!%p4554_p0)
}
 0x8a7   : > { %s4596_s26 = smov 256   ;;  %s4597_s14 = smov 16  }
 0x8a8   : > { %4017 = dma.vmem_to_hbm [thread:$0]  (%p4696_p5), %s6105_s12, 8192, %s6103_s30, %s6113_s21, %s4596_s26, %s4596_s26, %s4597_s14  }
 0x8a9 PF: > { %p4023_p1 = scmp.ge.s32.totalorder %s4592_s20, 2  ;;  %s3434_s16 = sand.u32 1, %s4580_s17  }
 0x8aa   : > { %s3435_s15 = scalar_lea.sflag [#allocation3], %s3434_s16 }
 0x8ab   : > { %p4020_p2 = pnand %p4023_p1, %p4700_p6 }
 0x8ad   : > { %4575 = dma.done.wait (!%p4020_p2), %s3435_s15, 8192  }
 0x8ae   : > { %4577 = vsyncadd (!%p4020_p2), %s3435_s15, 4294959104  ;;  %s6169_s22 = sld [smem:[#allocation5_spill]]  ;;  %p21_p3 = scmp.ge.s32.totalorder %s4683_s23, 4  }
 0x8af   : > { %s6170_s17 = smov %s4584_s18  ;;  %s6171_s18 = smov %s4588_s19 }
 0x8b0   : > { %s6173_s20 = smov %s4683_s23  ;;  %23 = sbr.rel (!%p21_p3) target bundleno = 3 (0x3), region = 105 }
 0x8b4   : > { %s6172_s19 = smov %s6169_s22 }
 0x8b7   :  { %3440 = vsyncpa [#allocation3], 1 }
 0x8b8   :  { %3442 = vsyncpa [#allocation3 + $0x1], 1 }

</bundles_post_ra>
